<compile_context>
chip_gen: v5e
topology: v5e:2x2
jax: 0.10.0
libtpu: 0.0.40
codegen_flags: <defaults>
</compile_context>

<pallas_src>
import functools
import math

import jax
import jax.numpy as jnp
from jax import lax
from jax.experimental import pallas as pl
from jax.experimental.pallas import tpu as pltpu


# GEMM tile targets (bf16 in, f32 acc): ~16-20 MiB working set.
_TM, _TN, _TK = 1024, 1024, 512
_LN_TM = 256          # LayerNorm row tile (safe on v7x even at D ~ 12k)
_ATTN_TQ = 256        # flash-attention query tile
_ATTN_TKV = 256       # flash-attention key/value tile (matches 256-wide MXU)
_ATTN_HEADS = 4       # heads per flash-attention grid step


@functools.lru_cache(maxsize=None)
def _vmem_limit_bytes():
    """Scoped-VMEM budget: 85% of physical VMEM on the local chip."""
    try:
        cap = getattr(pltpu.get_tpu_info(), "vmem_capacity_bytes", None)
        if cap:
            return int(cap * 0.85)
    except Exception:
        pass
    return 48 * 1024 * 1024   # conservative fallback (fits v7x's 64 MiB)


def _round_up(x, m):
    return ((x + m - 1) // m) * m


def _tile(dim, target, align):
    """Largest multiple of `align` dividing `dim`, <= target; else full dim."""
    if dim % align != 0:
        return dim
    t = min((target // align) * align, dim)
    while t >= align:
        if dim % t == 0:
            return t
        t -= align
    return dim


def _divisor(dim, target):
    t = min(target, dim)
    while dim % t != 0:
        t -= 1
    return t


# ----------------------------- Pallas kernels ------------------------------

def _gemm_kernel(*refs, activation, has_bias, has_residual):
    # refs: x, w, [bias], [residual], out, acc_scratch
    idx = 0
    x_ref = refs[idx]; idx += 1
    w_ref = refs[idx]; idx += 1
    b_ref = None
    r_ref = None
    if has_bias:
        b_ref = refs[idx]; idx += 1
    if has_residual:
        r_ref = refs[idx]; idx += 1
    o_ref = refs[idx]; idx += 1
    acc_ref = refs[idx]

    k = pl.program_id(2)

    @pl.when(k == 0)
    def _():
        acc_ref[...] = jnp.zeros_like(acc_ref)

    # bf16 operands, f32 accumulation on the MXU.
    acc_ref[...] += jnp.dot(x_ref[...], w_ref[...],
                            preferred_element_type=jnp.float32)

    @pl.when(k == pl.num_programs(2) - 1)
    def _():
        y = acc_ref[...]
        if has_bias:
            y = y + b_ref[...].astype(jnp.float32)
        if activation == "gelu":
            # exact (erf) GELU, matching torch.nn.GELU default
            y = 0.5 * y * (1.0 + lax.erf(y * jnp.float32(0.7071067811865476)))
        if has_residual:
            y = y + r_ref[...].astype(jnp.float32)
        o_ref[...] = y.astype(o_ref.dtype)


def _layernorm_kernel(x_ref, g_ref, b_ref, o_ref):
    x = x_ref[...].astype(jnp.float32)
    mu = jnp.mean(x, axis=-1, keepdims=True)
    var = jnp.mean(jnp.square(x - mu), axis=-1, keepdims=True)
    xn = (x - mu) * lax.rsqrt(var + 1e-5)
    o_ref[...] = (xn * g_ref[...] + b_ref[...]).astype(o_ref.dtype)


def _flash_attn_kernel(q_ref, k_ref, v_ref, o_ref, m_sc, l_sc, acc_sc, *,
                       scale):
    # Online-softmax over kv tiles; never materializes an (L, L) block.
    kv = pl.program_id(2)

    @pl.when(kv == 0)
    def _():
        m_sc[...] = jnp.full_like(m_sc, -jnp.inf)
        l_sc[...] = jnp.zeros_like(l_sc)
        acc_sc[...] = jnp.zeros_like(acc_sc)

    q = q_ref[...]                          # (hblk, tq,  d) bf16
    k = k_ref[...]                          # (hblk, tkv, d) bf16
    v = v_ref[...]                          # (hblk, tkv, d) bf16
    # batched QK^T without explicit transposes
    s = lax.dot_general(q, k, (((2,), (2,)), ((0,), (0,))),
                        preferred_element_type=jnp.float32) * scale
    m_prev = m_sc[...]
    m_new = jnp.maximum(m_prev, jnp.max(s, axis=-1, keepdims=True))
    alpha = jnp.exp(m_prev - m_new)
    p = jnp.exp(s - m_new)
    l_sc[...] = alpha * l_sc[...] + jnp.sum(p, axis=-1, keepdims=True)
    acc_sc[...] = alpha * acc_sc[...] + lax.dot_general(
        p.astype(v.dtype), v, (((2,), (1,)), ((0,), (0,))),
        preferred_element_type=jnp.float32)
    m_sc[...] = m_new

    @pl.when(kv == pl.num_programs(2) - 1)
    def _():
        o_ref[...] = (acc_sc[...] * pl.reciprocal(l_sc[...], approx=True)
                      ).astype(o_ref.dtype)


# ----------------------------- kernel wrappers ------------------------------

def gemm(x, w, bias=None, residual=None, activation=None,
         out_dtype=jnp.bfloat16, tm=_TM, tn=_TN, tk=_TK):
    """y = act(x @ w [+ bias]) [+ residual], tiled (M, N, K) + K-pipelined."""
    M, K = x.shape
    N = w.shape[1]

    # Pad the output-feature axis to a lane-dense multiple of 128 so a
    # non-128-multiple N (e.g. vocab=50257) never falls back to a full-width
    # output tile that blows VMEM.  Padded columns are zero and sliced off.
    n_pad = _round_up(N, 128)
    if n_pad != N:
        w = jnp.pad(w, ((0, 0), (0, n_pad - N)))
        if bias is not None:
            bias = jnp.pad(bias, ((0, 0), (0, n_pad - N)))
        if residual is not None:
            residual = jnp.pad(residual, ((0, 0), (0, n_pad - N)))

    tm = _tile(M, tm, 8)
    tn = _tile(n_pad, tn, 128)   # lane-dense output tile
    tk = _tile(K, tk, 128)
    grid = (M // tm, n_pad // tn, K // tk)

    in_specs = [pl.BlockSpec((tm, tk), lambda i, j, k: (i, k)),
                pl.BlockSpec((tk, tn), lambda i, j, k: (k, j))]
    args = [x, w]
    if bias is not None:
        in_specs.append(pl.BlockSpec((1, tn), lambda i, j, k: (0, j)))
        args.append(bias)
    if residual is not None:
        in_specs.append(pl.BlockSpec((tm, tn), lambda i, j, k: (i, j)))
        args.append(residual)

    kernel = functools.partial(_gemm_kernel, activation=activation,
                               has_bias=bias is not None,
                               has_residual=residual is not None)
    out = pl.pallas_call(
        kernel,
        out_shape=jax.ShapeDtypeStruct((M, n_pad), out_dtype),
        grid=grid,
        in_specs=in_specs,
        out_specs=pl.BlockSpec((tm, tn), lambda i, j, k: (i, j)),
        scratch_shapes=[pltpu.VMEM((tm, tn), jnp.float32)],
        compiler_params=pltpu.CompilerParams(
            dimension_semantics=("parallel", "parallel", "arbitrary"),
            vmem_limit_bytes=_vmem_limit_bytes()),
    )(*args)
    if n_pad != N:
        out = out[:, :N]
    return out


def layernorm(x, g, b, out_dtype=jnp.bfloat16, tm=_LN_TM):
    """Row LayerNorm; bf16 in/out keeps the residual-stream DMA halved."""
    M, D = x.shape
    tm = _tile(M, tm, 8)
    return pl.pallas_call(
        _layernorm_kernel,
        out_shape=jax.ShapeDtypeStruct((M, D), out_dtype),
        grid=(M // tm,),
        in_specs=[pl.BlockSpec((tm, D), lambda i: (i, 0)),
                  pl.BlockSpec((1, D), lambda i: (0, 0)),
                  pl.BlockSpec((1, D), lambda i: (0, 0))],
        out_specs=pl.BlockSpec((tm, D), lambda i: (i, 0)),
        compiler_params=pltpu.CompilerParams(
            dimension_semantics=("parallel",),
            vmem_limit_bytes=_vmem_limit_bytes()),
    )(x, g, b)


def attention(q, k, v, heads_per_step=_ATTN_HEADS, tq=_ATTN_TQ, tkv=_ATTN_TKV):
    """Flash-style online-softmax attention over (B*h, L, d) tensors."""
    BH, L, d = q.shape
    hblk = _divisor(BH, heads_per_step)
    tq = _tile(L, tq, 8)
    tkv = _tile(L, tkv, 128)
    scale = 1.0 / math.sqrt(d)

    q_spec = pl.BlockSpec((hblk, tq, d), lambda i, qi, ki: (i, qi, 0))
    kv_spec = pl.BlockSpec((hblk, tkv, d), lambda i, qi, ki: (i, ki, 0))

    return pl.pallas_call(
        functools.partial(_flash_attn_kernel, scale=scale),
        out_shape=jax.ShapeDtypeStruct((BH, L, d), jnp.bfloat16),
        grid=(BH // hblk, L // tq, L // tkv),
        in_specs=[q_spec, kv_spec, kv_spec],
        out_specs=q_spec,
        scratch_shapes=[pltpu.VMEM((hblk, tq, 1), jnp.float32),   # running max
                        pltpu.VMEM((hblk, tq, 1), jnp.float32),   # running sum
                        pltpu.VMEM((hblk, tq, d), jnp.float32)],  # output acc
        compiler_params=pltpu.CompilerParams(
            dimension_semantics=("parallel", "parallel", "arbitrary"),
            vmem_limit_bytes=_vmem_limit_bytes()),
    )(q, k, v)


# ----------------------------- model definition -----------------------------

def init_params(key, vocab_size, seq_len, embed_dim, num_heads, num_layers,
                mlp_ratio=4):
    keys = jax.random.split(key, 2 + num_layers)

    def w_init(k, fan_in, fan_out):
        # weights stored pre-transposed (in, out) and in bf16 for the MXU
        w = jax.random.normal(k, (fan_in, fan_out), jnp.float32) * 0.02
        return w.astype(jnp.bfloat16)

    params = {
        "token_emb": jax.random.normal(keys[0], (vocab_size, embed_dim),
                                       jnp.float32) * 0.02,
        "pos_emb": jnp.zeros((1, seq_len, embed_dim), jnp.float32),
        "ln_f_g": jnp.ones((1, embed_dim), jnp.float32),
        "ln_f_b": jnp.zeros((1, embed_dim), jnp.float32),
        "head_w": w_init(keys[1], embed_dim, vocab_size),
        "blocks": [],
    }
    hidden = mlp_ratio * embed_dim
    for li in range(num_layers):
        bk = jax.random.split(keys[2 + li], 6)
        # fused QKV weight: (D, 3D) = concat(q_w, k_w, v_w) on the output axis
        qkv_w = jnp.concatenate([w_init(bk[0], embed_dim, embed_dim),
                                 w_init(bk[1], embed_dim, embed_dim),
                                 w_init(bk[2], embed_dim, embed_dim)], axis=1)
        params["blocks"].append({
            "ln1_g": jnp.ones((1, embed_dim), jnp.float32),
            "ln1_b": jnp.zeros((1, embed_dim), jnp.float32),
            "ln2_g": jnp.ones((1, embed_dim), jnp.float32),
            "ln2_b": jnp.zeros((1, embed_dim), jnp.float32),
            "qkv_w": qkv_w,
            "qkv_b": jnp.zeros((1, 3 * embed_dim), jnp.float32),
            "o_w": w_init(bk[3], embed_dim, embed_dim),
            "o_b": jnp.zeros((1, embed_dim), jnp.float32),
            "mlp_w1": w_init(bk[4], embed_dim, hidden),
            "mlp_b1": jnp.zeros((1, hidden), jnp.float32),
            "mlp_w2": w_init(bk[5], hidden, embed_dim),
            "mlp_b2": jnp.zeros((1, embed_dim), jnp.float32),
        })
    return params


def gpt3_forward(params, idx, num_heads):
    B, L = idx.shape
    D = params["token_emb"].shape[1]
    h = num_heads
    d = D // h

    # token embedding gather + learned positional embedding (JAX glue)
    x = params["token_emb"][idx] + params["pos_emb"][:, :L, :]   # (B, L, D) f32
    x2 = x.reshape(B * L, D).astype(jnp.bfloat16)                # bf16 residual stream

    for blk in params["blocks"]:
        # --- attention sub-block ---
        n1 = layernorm(x2, blk["ln1_g"], blk["ln1_b"])           # bf16
        qkv = gemm(n1, blk["qkv_w"], bias=blk["qkv_b"])          # (B*L, 3D) bf16
        # TODO(synk): consuming the qkv slab directly from the attention
        # BlockSpecs would remove these HBM copies, but the module's flat
        # .view(B, h, L, d) (no head transpose) makes head chunks row-ranges
        # of the flat stream rather than column slices, so we keep XLA
        # slices + flat reshapes to preserve the reference semantics exactly.
        q, k, v = qkv[:, :D], qkv[:, D:2 * D], qkv[:, 2 * D:]
        qh = q.reshape(B * h, L, d)   # reproduces torch .view(B, h, L, d)
        kh = k.reshape(B * h, L, d)
        vh = v.reshape(B * h, L, d)
        ao = attention(qh, kh, vh)                               # (B*h, L, d) bf16
        ao = ao.reshape(B * L, D)
        # o-proj with bias + residual fused into the epilogue
        x2 = gemm(ao, blk["o_w"], bias=blk["o_b"], residual=x2)

        # --- MLP sub-block ---
        n2 = layernorm(x2, blk["ln2_g"], blk["ln2_b"])           # bf16
        hdn = gemm(n2, blk["mlp_w1"], bias=blk["mlp_b1"],
                   activation="gelu")                            # bf16 hidden
        x2 = gemm(hdn, blk["mlp_w2"], bias=blk["mlp_b2"], residual=x2)

    xf = layernorm(x2, params["ln_f_g"], params["ln_f_b"])       # bf16
    logits = gemm(xf, params["head_w"], out_dtype=jnp.float32)   # (B*L, vocab)
    return logits.reshape(B, L, -1)


# ----------------------------------- main ------------------------------------

if __name__ == "__main__":
    vocab_size = 64
    seq_len = 8
    embed_dim = 32
    num_heads = 4
    num_layers = 2
    batch = 2

    key = jax.random.PRNGKey(0)
    pkey, ikey = jax.random.split(key)
    params = init_params(pkey, vocab_size, seq_len, embed_dim, num_heads,
                         num_layers)
    idx = jax.random.randint(ikey, (batch, seq_len), 0, vocab_size,
                             dtype=jnp.int32)

    fwd = jax.jit(gpt3_forward, static_argnums=(2,))
    logits = fwd(params, idx, num_heads)
    jax.block_until_ready(logits)
    assert logits.shape == (batch, seq_len, vocab_size)
    print("KERNEL_OK")
</pallas_src>

<mosaic_0001>
module attributes {stable_mosaic.version = 11 : i64} {
  func.func @_layernorm_kernel(%arg0: i32, %arg1: memref<16x32xbf16, #tpu.memory_space<vmem>>, %arg2: memref<1x32xf32, #tpu.memory_space<vmem>>, %arg3: memref<1x32xf32, #tpu.memory_space<vmem>>, %arg4: memref<16x32xbf16, #tpu.memory_space<vmem>>) attributes {dimension_semantics = [#tpu.dimension_semantics<parallel>], iteration_bounds = array<i64: 1>, scalar_prefetch = 0 : i64, scratch_operands = 0 : i64, tpu.core_type = #tpu.core_type<tc>, window_params = [{transform_indices = @transform_0, window_bounds = array<i64: 16, 32>}, {pipeline_mode = #tpu.pipeline_mode<synchronous>, transform_indices = @transform_1, window_bounds = array<i64: 1, 32>}, {pipeline_mode = #tpu.pipeline_mode<synchronous>, transform_indices = @transform_2, window_bounds = array<i64: 1, 32>}, {transform_indices = @transform_3, window_bounds = array<i64: 16, 32>}]} {
    %c0 = arith.constant 0 : index
    %c0_0 = arith.constant 0 : index
    %0 = vector.load %arg1[%c0, %c0_0] : memref<16x32xbf16, #tpu.memory_space<vmem>>, vector<16x32xbf16>
    %1 = arith.extf %0 : vector<16x32xbf16> to vector<16x32xf32>
    %cst = arith.constant dense<0.000000e+00> : vector<16xf32>
    %2 = vector.multi_reduction <add>, %1, %cst [1] : vector<16x32xf32> to vector<16xf32>
    %3 = vector.shape_cast %2 : vector<16xf32> to vector<16x1xf32>
    %cst_1 = arith.constant 3.200000e+01 : f32
    %4 = vector.broadcast %cst_1 : f32 to vector<16x1xf32>
    %5 = arith.divf %3, %4 : vector<16x1xf32>
    %6 = vector.broadcast %5 : vector<16x1xf32> to vector<16x32xf32>
    %7 = arith.subf %1, %6 : vector<16x32xf32>
    %8 = arith.mulf %7, %7 : vector<16x32xf32>
    %cst_2 = arith.constant dense<0.000000e+00> : vector<16xf32>
    %9 = vector.multi_reduction <add>, %8, %cst_2 [1] : vector<16x32xf32> to vector<16xf32>
    %10 = vector.shape_cast %9 : vector<16xf32> to vector<16x1xf32>
    %cst_3 = arith.constant 3.200000e+01 : f32
    %11 = vector.broadcast %cst_3 : f32 to vector<16x1xf32>
    %12 = arith.divf %10, %11 : vector<16x1xf32>
    %13 = vector.broadcast %5 : vector<16x1xf32> to vector<16x32xf32>
    %14 = arith.subf %1, %13 : vector<16x32xf32>
    %cst_4 = arith.constant 9.99999974E-6 : f32
    %15 = vector.broadcast %cst_4 : f32 to vector<16x1xf32>
    %16 = arith.addf %12, %15 : vector<16x1xf32>
    %17 = math.rsqrt %16 : vector<16x1xf32>
    %18 = vector.broadcast %17 : vector<16x1xf32> to vector<16x32xf32>
    %19 = arith.mulf %14, %18 : vector<16x32xf32>
    %c0_5 = arith.constant 0 : index
    %c0_6 = arith.constant 0 : index
    %20 = vector.load %arg2[%c0_5, %c0_6] : memref<1x32xf32, #tpu.memory_space<vmem>>, vector<1x32xf32>
    %21 = vector.broadcast %20 : vector<1x32xf32> to vector<16x32xf32>
    %22 = arith.mulf %19, %21 : vector<16x32xf32>
    %c0_7 = arith.constant 0 : index
    %c0_8 = arith.constant 0 : index
    %23 = vector.load %arg3[%c0_7, %c0_8] : memref<1x32xf32, #tpu.memory_space<vmem>>, vector<1x32xf32>
    %24 = vector.broadcast %23 : vector<1x32xf32> to vector<16x32xf32>
    %25 = arith.addf %22, %24 : vector<16x32xf32>
    %26 = arith.truncf %25 : vector<16x32xf32> to vector<16x32xbf16>
    %c0_9 = arith.constant 0 : index
    %c0_10 = arith.constant 0 : index
    %27 = vector.load %arg4[%c0_9, %c0_10] : memref<16x32xbf16, #tpu.memory_space<vmem>>, vector<16x32xbf16>
    tpu.vector_store %arg4[%c0_9, %c0_10], %26 {strides = array<i32>} : memref<16x32xbf16, #tpu.memory_space<vmem>>, vector<16x32xbf16>,
    return
  }
  func.func @transform_0(%arg0: i32) -> (i32, i32) {
    %c0_i32 = arith.constant 0 : i32
    %c0_i32_0 = arith.constant 0 : i32
    return %arg0, %c0_i32 : i32, i32
  }
  func.func @transform_1(%arg0: i32) -> (i32, i32) {
    %c0_i32 = arith.constant 0 : i32
    %c0_i32_0 = arith.constant 0 : i32
    %c0_i32_1 = arith.constant 0 : i32
    return %c0_i32, %c0_i32_0 : i32, i32
  }
  func.func @transform_2(%arg0: i32) -> (i32, i32) {
    %c0_i32 = arith.constant 0 : i32
    %c0_i32_0 = arith.constant 0 : i32
    %c0_i32_1 = arith.constant 0 : i32
    return %c0_i32, %c0_i32_0 : i32, i32
  }
  func.func @transform_3(%arg0: i32) -> (i32, i32) {
    %c0_i32 = arith.constant 0 : i32
    %c0_i32_0 = arith.constant 0 : i32
    return %arg0, %c0_i32 : i32, i32
  }
}

module attributes {stable_mosaic.version = 11 : i64} {
  func.func @_gemm_kernel(%arg0: i32, %arg1: i32, %arg2: i32, %arg3: memref<16x32xbf16, #tpu.memory_space<vmem>>, %arg4: memref<32x128xbf16, #tpu.memory_space<vmem>>, %arg5: memref<1x128xf32, #tpu.memory_space<vmem>>, %arg6: memref<16x128xbf16, #tpu.memory_space<vmem>>, %arg7: memref<16x128xf32, #tpu.memory_space<vmem>>) attributes {dimension_semantics = [#tpu.dimension_semantics<parallel>, #tpu.dimension_semantics<parallel>, #tpu.dimension_semantics<arbitrary>], iteration_bounds = array<i64: 1, 1, 1>, scalar_prefetch = 0 : i64, scratch_operands = 1 : i64, tpu.core_type = #tpu.core_type<tc>, window_params = [{transform_indices = @transform_0, window_bounds = array<i64: 16, 32>}, {transform_indices = @transform_1, window_bounds = array<i64: 32, 128>}, {transform_indices = @transform_2, window_bounds = array<i64: 1, 128>}, {transform_indices = @transform_3, window_bounds = array<i64: 16, 128>}]} {
    %c0_i32 = arith.constant 0 : i32
    %0 = arith.cmpi eq, %arg2, %c0_i32 : i32
    %1 = arith.extui %0 : i1 to i32
    %c0_i32_0 = arith.constant 0 : i32
    %2 = arith.cmpi ne, %1, %c0_i32_0 : i32
    scf.if %2 {
      %cst_10 = arith.constant 0.000000e+00 : f32
      %12 = vector.broadcast %cst_10 : f32 to vector<16x128xf32>
      %c0_11 = arith.constant 0 : index
      %c0_12 = arith.constant 0 : index
      %13 = vector.load %arg7[%c0_11, %c0_12] : memref<16x128xf32, #tpu.memory_space<vmem>>, vector<16x128xf32>
      tpu.vector_store %arg7[%c0_11, %c0_12], %12 {strides = array<i32>} : memref<16x128xf32, #tpu.memory_space<vmem>>, vector<16x128xf32>,
    } else {
    }
    %c0 = arith.constant 0 : index
    %c0_1 = arith.constant 0 : index
    %3 = vector.load %arg7[%c0, %c0_1] : memref<16x128xf32, #tpu.memory_space<vmem>>, vector<16x128xf32>
    %c0_2 = arith.constant 0 : index
    %c0_3 = arith.constant 0 : index
    %4 = vector.load %arg3[%c0_2, %c0_3] : memref<16x32xbf16, #tpu.memory_space<vmem>>, vector<16x32xbf16>
    %c0_4 = arith.constant 0 : index
    %c0_5 = arith.constant 0 : index
    %5 = vector.load %arg4[%c0_4, %c0_5] : memref<32x128xbf16, #tpu.memory_space<vmem>>, vector<32x128xbf16>
    %cst = arith.constant dense<0.000000e+00> : vector<16x128xf32>
    %6 = tpu.matmul %4, %5, %cst {dimension_numbers = #tpu.dot_dimension_numbers<[1], [0], [0], [1], [0, 0, 1, 1], [], []>} : vector<16x32xbf16>, vector<32x128xbf16>, vector<16x128xf32> -> vector<16x128xf32>
    %7 = arith.addf %3, %6 : vector<16x128xf32>
    %c0_6 = arith.constant 0 : index
    %c0_7 = arith.constant 0 : index
    %8 = vector.load %arg7[%c0_6, %c0_7] : memref<16x128xf32, #tpu.memory_space<vmem>>, vector<16x128xf32>
    tpu.vector_store %arg7[%c0_6, %c0_7], %7 {strides = array<i32>} : memref<16x128xf32, #tpu.memory_space<vmem>>, vector<16x128xf32>,
    %c0_i32_8 = arith.constant 0 : i32
    %9 = arith.cmpi eq, %arg2, %c0_i32_8 : i32
    %10 = arith.extui %9 : i1 to i32
    %c0_i32_9 = arith.constant 0 : i32
    %11 = arith.cmpi ne, %10, %c0_i32_9 : i32
    scf.if %11 {
      %c0_10 = arith.constant 0 : index
      %c0_11 = arith.constant 0 : index
      %12 = vector.load %arg7[%c0_10, %c0_11] : memref<16x128xf32, #tpu.memory_space<vmem>>, vector<16x128xf32>
      %c0_12 = arith.constant 0 : index
      %c0_13 = arith.constant 0 : index
      %13 = vector.load %arg5[%c0_12, %c0_13] : memref<1x128xf32, #tpu.memory_space<vmem>>, vector<1x128xf32>
      %14 = vector.broadcast %13 : vector<1x128xf32> to vector<16x128xf32>
      %15 = arith.addf %12, %14 : vector<16x128xf32>
      %16 = arith.truncf %15 : vector<16x128xf32> to vector<16x128xbf16>
      %c0_14 = arith.constant 0 : index
      %c0_15 = arith.constant 0 : index
      %17 = vector.load %arg6[%c0_14, %c0_15] : memref<16x128xbf16, #tpu.memory_space<vmem>>, vector<16x128xbf16>
      tpu.vector_store %arg6[%c0_14, %c0_15], %16 {strides = array<i32>} : memref<16x128xbf16, #tpu.memory_space<vmem>>, vector<16x128xbf16>,
    } else {
    }
    return
  }
  func.func @transform_0(%arg0: i32, %arg1: i32, %arg2: i32) -> (i32, i32) {
    %c0_i32 = arith.constant 0 : i32
    return %arg0, %arg2 : i32, i32
  }
  func.func @transform_1(%arg0: i32, %arg1: i32, %arg2: i32) -> (i32, i32) {
    %c0_i32 = arith.constant 0 : i32
    return %arg2, %arg1 : i32, i32
  }
  func.func @transform_2(%arg0: i32, %arg1: i32, %arg2: i32) -> (i32, i32) {
    %c0_i32 = arith.constant 0 : i32
    %c0_i32_0 = arith.constant 0 : i32
    return %c0_i32, %arg1 : i32, i32
  }
  func.func @transform_3(%arg0: i32, %arg1: i32, %arg2: i32) -> (i32, i32) {
    %c0_i32 = arith.constant 0 : i32
    return %arg0, %arg1 : i32, i32
  }
}

module attributes {stable_mosaic.version = 11 : i64} {
  func.func @_flash_attn_kernel(%arg0: i32, %arg1: i32, %arg2: i32, %arg3: memref<4x8x8xbf16, #tpu.memory_space<vmem>>, %arg4: memref<4x8x8xbf16, #tpu.memory_space<vmem>>, %arg5: memref<4x8x8xbf16, #tpu.memory_space<vmem>>, %arg6: memref<4x8x8xbf16, #tpu.memory_space<vmem>>, %arg7: memref<4x8x1xf32, #tpu.memory_space<vmem>>, %arg8: memref<4x8x1xf32, #tpu.memory_space<vmem>>, %arg9: memref<4x8x8xf32, #tpu.memory_space<vmem>>) attributes {dimension_semantics = [#tpu.dimension_semantics<parallel>, #tpu.dimension_semantics<parallel>, #tpu.dimension_semantics<arbitrary>], iteration_bounds = array<i64: 2, 1, 1>, scalar_prefetch = 0 : i64, scratch_operands = 3 : i64, tpu.core_type = #tpu.core_type<tc>, window_params = [{transform_indices = @transform_0, window_bounds = array<i64: 4, 8, 8>}, {transform_indices = @transform_1, window_bounds = array<i64: 4, 8, 8>}, {transform_indices = @transform_2, window_bounds = array<i64: 4, 8, 8>}, {transform_indices = @transform_3, window_bounds = array<i64: 4, 8, 8>}]} {
    %c0_i32 = arith.constant 0 : i32
    %0 = arith.cmpi eq, %arg2, %c0_i32 : i32
    %1 = arith.extui %0 : i1 to i32
    %c0_i32_0 = arith.constant 0 : i32
    %2 = arith.cmpi ne, %1, %c0_i32_0 : i32
    scf.if %2 {
      %cst_33 = arith.constant 0xFF800000 : f32
      %35 = vector.broadcast %cst_33 : f32 to vector<4x8x1xf32>
      %c0_34 = arith.constant 0 : index
      %c0_35 = arith.constant 0 : index
      %c0_36 = arith.constant 0 : index
      %36 = vector.load %arg7[%c0_34, %c0_35, %c0_36] : memref<4x8x1xf32, #tpu.memory_space<vmem>>, vector<4x8x1xf32>
      tpu.vector_store %arg7[%c0_34, %c0_35, %c0_36], %35 {strides = array<i32>} : memref<4x8x1xf32, #tpu.memory_space<vmem>>, vector<4x8x1xf32>,
      %cst_37 = arith.constant 0.000000e+00 : f32
      %37 = vector.broadcast %cst_37 : f32 to vector<4x8x1xf32>
      %c0_38 = arith.constant 0 : index
      %c0_39 = arith.constant 0 : index
      %c0_40 = arith.constant 0 : index
      %38 = vector.load %arg8[%c0_38, %c0_39, %c0_40] : memref<4x8x1xf32, #tpu.memory_space<vmem>>, vector<4x8x1xf32>
      tpu.vector_store %arg8[%c0_38, %c0_39, %c0_40], %37 {strides = array<i32>} : memref<4x8x1xf32, #tpu.memory_space<vmem>>, vector<4x8x1xf32>,
      %cst_41 = arith.constant 0.000000e+00 : f32
      %39 = vector.broadcast %cst_41 : f32 to vector<4x8x8xf32>
      %c0_42 = arith.constant 0 : index
      %c0_43 = arith.constant 0 : index
      %c0_44 = arith.constant 0 : index
      %40 = vector.load %arg9[%c0_42, %c0_43, %c0_44] : memref<4x8x8xf32, #tpu.memory_space<vmem>>, vector<4x8x8xf32>
      tpu.vector_store %arg9[%c0_42, %c0_43, %c0_44], %39 {strides = array<i32>} : memref<4x8x8xf32, #tpu.memory_space<vmem>>, vector<4x8x8xf32>,
    } else {
    }
    %c0 = arith.constant 0 : index
    %c0_1 = arith.constant 0 : index
    %c0_2 = arith.constant 0 : index
    %3 = vector.load %arg3[%c0, %c0_1, %c0_2] : memref<4x8x8xbf16, #tpu.memory_space<vmem>>, vector<4x8x8xbf16>
    %c0_3 = arith.constant 0 : index
    %c0_4 = arith.constant 0 : index
    %c0_5 = arith.constant 0 : index
    %4 = vector.load %arg4[%c0_3, %c0_4, %c0_5] : memref<4x8x8xbf16, #tpu.memory_space<vmem>>, vector<4x8x8xbf16>
    %c0_6 = arith.constant 0 : index
    %c0_7 = arith.constant 0 : index
    %c0_8 = arith.constant 0 : index
    %5 = vector.load %arg5[%c0_6, %c0_7, %c0_8] : memref<4x8x8xbf16, #tpu.memory_space<vmem>>, vector<4x8x8xbf16>
    %cst = arith.constant dense<0.000000e+00> : vector<4x8x8xf32>
    %6 = tpu.matmul %3, %4, %cst {dimension_numbers = #tpu.dot_dimension_numbers<[2], [2], [1], [1], [0, 0, 0, 1, 1, 1], [0], [0]>} : vector<4x8x8xbf16>, vector<4x8x8xbf16>, vector<4x8x8xf32> -> vector<4x8x8xf32>
    %cst_9 = arith.constant 0.353553385 : f32
    %7 = vector.broadcast %cst_9 : f32 to vector<4x8x8xf32>
    %8 = arith.mulf %6, %7 : vector<4x8x8xf32>
    %c0_10 = arith.constant 0 : index
    %c0_11 = arith.constant 0 : index
    %c0_12 = arith.constant 0 : index
    %9 = vector.load %arg7[%c0_10, %c0_11, %c0_12] : memref<4x8x1xf32, #tpu.memory_space<vmem>>, vector<4x8x1xf32>
    %cst_13 = arith.constant dense<0xFF800000> : vector<4x8xf32>
    %10 = vector.multi_reduction <maximumf>, %8, %cst_13 [2] : vector<4x8x8xf32> to vector<4x8xf32>
    %11 = vector.shape_cast %10 : vector<4x8xf32> to vector<4x8x1xf32>
    %12 = arith.maximumf %9, %11 : vector<4x8x1xf32>
    %13 = arith.subf %9, %12 : vector<4x8x1xf32>
    %14 = math.exp %13 : vector<4x8x1xf32>
    %15 = vector.broadcast %12 : vector<4x8x1xf32> to vector<4x8x8xf32>
    %16 = arith.subf %8, %15 : vector<4x8x8xf32>
    %17 = math.exp %16 : vector<4x8x8xf32>
    %c0_14 = arith.constant 0 : index
    %c0_15 = arith.constant 0 : index
    %c0_16 = arith.constant 0 : index
    %18 = vector.load %arg8[%c0_14, %c0_15, %c0_16] : memref<4x8x1xf32, #tpu.memory_space<vmem>>, vector<4x8x1xf32>
    %19 = arith.mulf %14, %18 : vector<4x8x1xf32>
    %cst_17 = arith.constant dense<0.000000e+00> : vector<4x8xf32>
    %20 = vector.multi_reduction <add>, %17, %cst_17 [2] : vector<4x8x8xf32> to vector<4x8xf32>
    %21 = vector.shape_cast %20 : vector<4x8xf32> to vector<4x8x1xf32>
    %22 = arith.addf %19, %21 : vector<4x8x1xf32>
    %c0_18 = arith.constant 0 : index
    %c0_19 = arith.constant 0 : index
    %c0_20 = arith.constant 0 : index
    %23 = vector.load %arg8[%c0_18, %c0_19, %c0_20] : memref<4x8x1xf32, #tpu.memory_space<vmem>>, vector<4x8x1xf32>
    tpu.vector_store %arg8[%c0_18, %c0_19, %c0_20], %22 {strides = array<i32>} : memref<4x8x1xf32, #tpu.memory_space<vmem>>, vector<4x8x1xf32>,
    %c0_21 = arith.constant 0 : index
    %c0_22 = arith.constant 0 : index
    %c0_23 = arith.constant 0 : index
    %24 = vector.load %arg9[%c0_21, %c0_22, %c0_23] : memref<4x8x8xf32, #tpu.memory_space<vmem>>, vector<4x8x8xf32>
    %25 = vector.broadcast %14 : vector<4x8x1xf32> to vector<4x8x8xf32>
    %26 = arith.mulf %25, %24 : vector<4x8x8xf32>
    %27 = arith.truncf %17 : vector<4x8x8xf32> to vector<4x8x8xbf16>
    %cst_24 = arith.constant dense<0.000000e+00> : vector<4x8x8xf32>
    %28 = tpu.matmul %27, %5, %cst_24 {dimension_numbers = #tpu.dot_dimension_numbers<[2], [1], [1], [2], [0, 0, 0, 1, 1, 2], [0], [0]>} : vector<4x8x8xbf16>, vector<4x8x8xbf16>, vector<4x8x8xf32> -> vector<4x8x8xf32>
    %29 = arith.addf %26, %28 : vector<4x8x8xf32>
    %c0_25 = arith.constant 0 : index
    %c0_26 = arith.constant 0 : index
    %c0_27 = arith.constant 0 : index
    %30 = vector.load %arg9[%c0_25, %c0_26, %c0_27] : memref<4x8x8xf32, #tpu.memory_space<vmem>>, vector<4x8x8xf32>
    tpu.vector_store %arg9[%c0_25, %c0_26, %c0_27], %29 {strides = array<i32>} : memref<4x8x8xf32, #tpu.memory_space<vmem>>, vector<4x8x8xf32>,
    %c0_28 = arith.constant 0 : index
    %c0_29 = arith.constant 0 : index
    %c0_30 = arith.constant 0 : index
    %31 = vector.load %arg7[%c0_28, %c0_29, %c0_30] : memref<4x8x1xf32, #tpu.memory_space<vmem>>, vector<4x8x1xf32>
    tpu.vector_store %arg7[%c0_28, %c0_29, %c0_30], %12 {strides = array<i32>} : memref<4x8x1xf32, #tpu.memory_space<vmem>>, vector<4x8x1xf32>,
    %c0_i32_31 = arith.constant 0 : i32
    %32 = arith.cmpi eq, %arg2, %c0_i32_31 : i32
    %33 = arith.extui %32 : i1 to i32
    %c0_i32_32 = arith.constant 0 : i32
    %34 = arith.cmpi ne, %33, %c0_i32_32 : i32
    scf.if %34 {
      %c0_33 = arith.constant 0 : index
      %c0_34 = arith.constant 0 : index
      %c0_35 = arith.constant 0 : index
      %35 = vector.load %arg9[%c0_33, %c0_34, %c0_35] : memref<4x8x8xf32, #tpu.memory_space<vmem>>, vector<4x8x8xf32>
      %c0_36 = arith.constant 0 : index
      %c0_37 = arith.constant 0 : index
      %c0_38 = arith.constant 0 : index
      %36 = vector.load %arg8[%c0_36, %c0_37, %c0_38] : memref<4x8x1xf32, #tpu.memory_space<vmem>>, vector<4x8x1xf32>
      %37 = tpu.reciprocal %36 {approx = true} : vector<4x8x1xf32> -> vector<4x8x1xf32>
      %38 = vector.broadcast %37 : vector<4x8x1xf32> to vector<4x8x8xf32>
      %39 = arith.mulf %35, %38 : vector<4x8x8xf32>
      %40 = arith.truncf %39 : vector<4x8x8xf32> to vector<4x8x8xbf16>
      %c0_39 = arith.constant 0 : index
      %c0_40 = arith.constant 0 : index
      %c0_41 = arith.constant 0 : index
      %41 = vector.load %arg6[%c0_39, %c0_40, %c0_41] : memref<4x8x8xbf16, #tpu.memory_space<vmem>>, vector<4x8x8xbf16>
      tpu.vector_store %arg6[%c0_39, %c0_40, %c0_41], %40 {strides = array<i32>} : memref<4x8x8xbf16, #tpu.memory_space<vmem>>, vector<4x8x8xbf16>,
    } else {
    }
    return
  }
  func.func @transform_0(%arg0: i32, %arg1: i32, %arg2: i32) -> (i32, i32, i32) {
    %c0_i32 = arith.constant 0 : i32
    %c0_i32_0 = arith.constant 0 : i32
    return %arg0, %arg1, %c0_i32 : i32, i32, i32
  }
  func.func @transform_1(%arg0: i32, %arg1: i32, %arg2: i32) -> (i32, i32, i32) {
    %c0_i32 = arith.constant 0 : i32
    %c0_i32_0 = arith.constant 0 : i32
    return %arg0, %arg2, %c0_i32 : i32, i32, i32
  }
  func.func @transform_2(%arg0: i32, %arg1: i32, %arg2: i32) -> (i32, i32, i32) {
    %c0_i32 = arith.constant 0 : i32
    %c0_i32_0 = arith.constant 0 : i32
    return %arg0, %arg2, %c0_i32 : i32, i32, i32
  }
  func.func @transform_3(%arg0: i32, %arg1: i32, %arg2: i32) -> (i32, i32, i32) {
    %c0_i32 = arith.constant 0 : i32
    %c0_i32_0 = arith.constant 0 : i32
    return %arg0, %arg1, %c0_i32 : i32, i32, i32
  }
}

module attributes {stable_mosaic.version = 11 : i64} {
  func.func @_gemm_kernel(%arg0: i32, %arg1: i32, %arg2: i32, %arg3: memref<16x32xbf16, #tpu.memory_space<vmem>>, %arg4: memref<32x128xbf16, #tpu.memory_space<vmem>>, %arg5: memref<1x128xf32, #tpu.memory_space<vmem>>, %arg6: memref<16x128xbf16, #tpu.memory_space<vmem>>, %arg7: memref<16x128xbf16, #tpu.memory_space<vmem>>, %arg8: memref<16x128xf32, #tpu.memory_space<vmem>>) attributes {dimension_semantics = [#tpu.dimension_semantics<parallel>, #tpu.dimension_semantics<parallel>, #tpu.dimension_semantics<arbitrary>], iteration_bounds = array<i64: 1, 1, 1>, scalar_prefetch = 0 : i64, scratch_operands = 1 : i64, tpu.core_type = #tpu.core_type<tc>, window_params = [{transform_indices = @transform_0, window_bounds = array<i64: 16, 32>}, {transform_indices = @transform_1, window_bounds = array<i64: 32, 128>}, {transform_indices = @transform_2, window_bounds = array<i64: 1, 128>}, {transform_indices = @transform_3, window_bounds = array<i64: 16, 128>}, {transform_indices = @transform_4, window_bounds = array<i64: 16, 128>}]} {
    %c0_i32 = arith.constant 0 : i32
    %0 = arith.cmpi eq, %arg2, %c0_i32 : i32
    %1 = arith.extui %0 : i1 to i32
    %c0_i32_0 = arith.constant 0 : i32
    %2 = arith.cmpi ne, %1, %c0_i32_0 : i32
    scf.if %2 {
      %cst_10 = arith.constant 0.000000e+00 : f32
      %12 = vector.broadcast %cst_10 : f32 to vector<16x128xf32>
      %c0_11 = arith.constant 0 : index
      %c0_12 = arith.constant 0 : index
      %13 = vector.load %arg8[%c0_11, %c0_12] : memref<16x128xf32, #tpu.memory_space<vmem>>, vector<16x128xf32>
      tpu.vector_store %arg8[%c0_11, %c0_12], %12 {strides = array<i32>} : memref<16x128xf32, #tpu.memory_space<vmem>>, vector<16x128xf32>,
    } else {
    }
    %c0 = arith.constant 0 : index
    %c0_1 = arith.constant 0 : index
    %3 = vector.load %arg8[%c0, %c0_1] : memref<16x128xf32, #tpu.memory_space<vmem>>, vector<16x128xf32>
    %c0_2 = arith.constant 0 : index
    %c0_3 = arith.constant 0 : index
    %4 = vector.load %arg3[%c0_2, %c0_3] : memref<16x32xbf16, #tpu.memory_space<vmem>>, vector<16x32xbf16>
    %c0_4 = arith.constant 0 : index
    %c0_5 = arith.constant 0 : index
    %5 = vector.load %arg4[%c0_4, %c0_5] : memref<32x128xbf16, #tpu.memory_space<vmem>>, vector<32x128xbf16>
    %cst = arith.constant dense<0.000000e+00> : vector<16x128xf32>
    %6 = tpu.matmul %4, %5, %cst {dimension_numbers = #tpu.dot_dimension_numbers<[1], [0], [0], [1], [0, 0, 1, 1], [], []>} : vector<16x32xbf16>, vector<32x128xbf16>, vector<16x128xf32> -> vector<16x128xf32>
    %7 = arith.addf %3, %6 : vector<16x128xf32>
    %c0_6 = arith.constant 0 : index
    %c0_7 = arith.constant 0 : index
    %8 = vector.load %arg8[%c0_6, %c0_7] : memref<16x128xf32, #tpu.memory_space<vmem>>, vector<16x128xf32>
    tpu.vector_store %arg8[%c0_6, %c0_7], %7 {strides = array<i32>} : memref<16x128xf32, #tpu.memory_space<vmem>>, vector<16x128xf32>,
    %c0_i32_8 = arith.constant 0 : i32
    %9 = arith.cmpi eq, %arg2, %c0_i32_8 : i32
    %10 = arith.extui %9 : i1 to i32
    %c0_i32_9 = arith.constant 0 : i32
    %11 = arith.cmpi ne, %10, %c0_i32_9 : i32
    scf.if %11 {
      %c0_10 = arith.constant 0 : index
      %c0_11 = arith.constant 0 : index
      %12 = vector.load %arg8[%c0_10, %c0_11] : memref<16x128xf32, #tpu.memory_space<vmem>>, vector<16x128xf32>
      %c0_12 = arith.constant 0 : index
      %c0_13 = arith.constant 0 : index
      %13 = vector.load %arg5[%c0_12, %c0_13] : memref<1x128xf32, #tpu.memory_space<vmem>>, vector<1x128xf32>
      %14 = vector.broadcast %13 : vector<1x128xf32> to vector<16x128xf32>
      %15 = arith.addf %12, %14 : vector<16x128xf32>
      %c0_14 = arith.constant 0 : index
      %c0_15 = arith.constant 0 : index
      %16 = vector.load %arg6[%c0_14, %c0_15] : memref<16x128xbf16, #tpu.memory_space<vmem>>, vector<16x128xbf16>
      %17 = arith.extf %16 : vector<16x128xbf16> to vector<16x128xf32>
      %18 = arith.addf %15, %17 : vector<16x128xf32>
      %19 = arith.truncf %18 : vector<16x128xf32> to vector<16x128xbf16>
      %c0_16 = arith.constant 0 : index
      %c0_17 = arith.constant 0 : index
      %20 = vector.load %arg7[%c0_16, %c0_17] : memref<16x128xbf16, #tpu.memory_space<vmem>>, vector<16x128xbf16>
      tpu.vector_store %arg7[%c0_16, %c0_17], %19 {strides = array<i32>} : memref<16x128xbf16, #tpu.memory_space<vmem>>, vector<16x128xbf16>,
    } else {
    }
    return
  }
  func.func @transform_0(%arg0: i32, %arg1: i32, %arg2: i32) -> (i32, i32) {
    %c0_i32 = arith.constant 0 : i32
    return %arg0, %arg2 : i32, i32
  }
  func.func @transform_1(%arg0: i32, %arg1: i32, %arg2: i32) -> (i32, i32) {
    %c0_i32 = arith.constant 0 : i32
    return %arg2, %arg1 : i32, i32
  }
  func.func @transform_2(%arg0: i32, %arg1: i32, %arg2: i32) -> (i32, i32) {
    %c0_i32 = arith.constant 0 : i32
    %c0_i32_0 = arith.constant 0 : i32
    return %c0_i32, %arg1 : i32, i32
  }
  func.func @transform_3(%arg0: i32, %arg1: i32, %arg2: i32) -> (i32, i32) {
    %c0_i32 = arith.constant 0 : i32
    return %arg0, %arg1 : i32, i32
  }
  func.func @transform_4(%arg0: i32, %arg1: i32, %arg2: i32) -> (i32, i32) {
    %c0_i32 = arith.constant 0 : i32
    return %arg0, %arg1 : i32, i32
  }
}

module attributes {stable_mosaic.version = 11 : i64} {
  func.func @_gemm_kernel(%arg0: i32, %arg1: i32, %arg2: i32, %arg3: memref<16x32xbf16, #tpu.memory_space<vmem>>, %arg4: memref<32x128xbf16, #tpu.memory_space<vmem>>, %arg5: memref<1x128xf32, #tpu.memory_space<vmem>>, %arg6: memref<16x128xbf16, #tpu.memory_space<vmem>>, %arg7: memref<16x128xf32, #tpu.memory_space<vmem>>) attributes {dimension_semantics = [#tpu.dimension_semantics<parallel>, #tpu.dimension_semantics<parallel>, #tpu.dimension_semantics<arbitrary>], iteration_bounds = array<i64: 1, 1, 1>, scalar_prefetch = 0 : i64, scratch_operands = 1 : i64, tpu.core_type = #tpu.core_type<tc>, window_params = [{transform_indices = @transform_0, window_bounds = array<i64: 16, 32>}, {transform_indices = @transform_1, window_bounds = array<i64: 32, 128>}, {transform_indices = @transform_2, window_bounds = array<i64: 1, 128>}, {transform_indices = @transform_3, window_bounds = array<i64: 16, 128>}]} {
    %c0_i32 = arith.constant 0 : i32
    %0 = arith.cmpi eq, %arg2, %c0_i32 : i32
    %1 = arith.extui %0 : i1 to i32
    %c0_i32_0 = arith.constant 0 : i32
    %2 = arith.cmpi ne, %1, %c0_i32_0 : i32
    scf.if %2 {
      %cst_10 = arith.constant 0.000000e+00 : f32
      %12 = vector.broadcast %cst_10 : f32 to vector<16x128xf32>
      %c0_11 = arith.constant 0 : index
      %c0_12 = arith.constant 0 : index
      %13 = vector.load %arg7[%c0_11, %c0_12] : memref<16x128xf32, #tpu.memory_space<vmem>>, vector<16x128xf32>
      tpu.vector_store %arg7[%c0_11, %c0_12], %12 {strides = array<i32>} : memref<16x128xf32, #tpu.memory_space<vmem>>, vector<16x128xf32>,
    } else {
    }
    %c0 = arith.constant 0 : index
    %c0_1 = arith.constant 0 : index
    %3 = vector.load %arg7[%c0, %c0_1] : memref<16x128xf32, #tpu.memory_space<vmem>>, vector<16x128xf32>
    %c0_2 = arith.constant 0 : index
    %c0_3 = arith.constant 0 : index
    %4 = vector.load %arg3[%c0_2, %c0_3] : memref<16x32xbf16, #tpu.memory_space<vmem>>, vector<16x32xbf16>
    %c0_4 = arith.constant 0 : index
    %c0_5 = arith.constant 0 : index
    %5 = vector.load %arg4[%c0_4, %c0_5] : memref<32x128xbf16, #tpu.memory_space<vmem>>, vector<32x128xbf16>
    %cst = arith.constant dense<0.000000e+00> : vector<16x128xf32>
    %6 = tpu.matmul %4, %5, %cst {dimension_numbers = #tpu.dot_dimension_numbers<[1], [0], [0], [1], [0, 0, 1, 1], [], []>} : vector<16x32xbf16>, vector<32x128xbf16>, vector<16x128xf32> -> vector<16x128xf32>
    %7 = arith.addf %3, %6 : vector<16x128xf32>
    %c0_6 = arith.constant 0 : index
    %c0_7 = arith.constant 0 : index
    %8 = vector.load %arg7[%c0_6, %c0_7] : memref<16x128xf32, #tpu.memory_space<vmem>>, vector<16x128xf32>
    tpu.vector_store %arg7[%c0_6, %c0_7], %7 {strides = array<i32>} : memref<16x128xf32, #tpu.memory_space<vmem>>, vector<16x128xf32>,
    %c0_i32_8 = arith.constant 0 : i32
    %9 = arith.cmpi eq, %arg2, %c0_i32_8 : i32
    %10 = arith.extui %9 : i1 to i32
    %c0_i32_9 = arith.constant 0 : i32
    %11 = arith.cmpi ne, %10, %c0_i32_9 : i32
    scf.if %11 {
      %c0_10 = arith.constant 0 : index
      %c0_11 = arith.constant 0 : index
      %12 = vector.load %arg7[%c0_10, %c0_11] : memref<16x128xf32, #tpu.memory_space<vmem>>, vector<16x128xf32>
      %c0_12 = arith.constant 0 : index
      %c0_13 = arith.constant 0 : index
      %13 = vector.load %arg5[%c0_12, %c0_13] : memref<1x128xf32, #tpu.memory_space<vmem>>, vector<1x128xf32>
      %14 = vector.broadcast %13 : vector<1x128xf32> to vector<16x128xf32>
      %15 = arith.addf %12, %14 : vector<16x128xf32>
      %cst_14 = arith.constant 5.000000e-01 : f32
      %16 = vector.broadcast %cst_14 : f32 to vector<16x128xf32>
      %17 = arith.mulf %16, %15 : vector<16x128xf32>
      %cst_15 = arith.constant 0.707106769 : f32
      %18 = vector.broadcast %cst_15 : f32 to vector<16x128xf32>
      %19 = arith.mulf %15, %18 : vector<16x128xf32>
      %20 = math.erf %19 : vector<16x128xf32>
      %cst_16 = arith.constant 1.000000e+00 : f32
      %21 = vector.broadcast %cst_16 : f32 to vector<16x128xf32>
      %22 = arith.addf %21, %20 : vector<16x128xf32>
      %23 = arith.mulf %17, %22 : vector<16x128xf32>
      %24 = arith.truncf %23 : vector<16x128xf32> to vector<16x128xbf16>
      %c0_17 = arith.constant 0 : index
      %c0_18 = arith.constant 0 : index
      %25 = vector.load %arg6[%c0_17, %c0_18] : memref<16x128xbf16, #tpu.memory_space<vmem>>, vector<16x128xbf16>
      tpu.vector_store %arg6[%c0_17, %c0_18], %24 {strides = array<i32>} : memref<16x128xbf16, #tpu.memory_space<vmem>>, vector<16x128xbf16>,
    } else {
    }
    return
  }
  func.func @transform_0(%arg0: i32, %arg1: i32, %arg2: i32) -> (i32, i32) {
    %c0_i32 = arith.constant 0 : i32
    return %arg0, %arg2 : i32, i32
  }
  func.func @transform_1(%arg0: i32, %arg1: i32, %arg2: i32) -> (i32, i32) {
    %c0_i32 = arith.constant 0 : i32
    return %arg2, %arg1 : i32, i32
  }
  func.func @transform_2(%arg0: i32, %arg1: i32, %arg2: i32) -> (i32, i32) {
    %c0_i32 = arith.constant 0 : i32
    %c0_i32_0 = arith.constant 0 : i32
    return %c0_i32, %arg1 : i32, i32
  }
  func.func @transform_3(%arg0: i32, %arg1: i32, %arg2: i32) -> (i32, i32) {
    %c0_i32 = arith.constant 0 : i32
    return %arg0, %arg1 : i32, i32
  }
}

module attributes {stable_mosaic.version = 11 : i64} {
  func.func @_gemm_kernel(%arg0: i32, %arg1: i32, %arg2: i32, %arg3: memref<16x128xbf16, #tpu.memory_space<vmem>>, %arg4: memref<128x128xbf16, #tpu.memory_space<vmem>>, %arg5: memref<1x128xf32, #tpu.memory_space<vmem>>, %arg6: memref<16x128xbf16, #tpu.memory_space<vmem>>, %arg7: memref<16x128xbf16, #tpu.memory_space<vmem>>, %arg8: memref<16x128xf32, #tpu.memory_space<vmem>>) attributes {dimension_semantics = [#tpu.dimension_semantics<parallel>, #tpu.dimension_semantics<parallel>, #tpu.dimension_semantics<arbitrary>], iteration_bounds = array<i64: 1, 1, 1>, scalar_prefetch = 0 : i64, scratch_operands = 1 : i64, tpu.core_type = #tpu.core_type<tc>, window_params = [{transform_indices = @transform_0, window_bounds = array<i64: 16, 128>}, {transform_indices = @transform_1, window_bounds = array<i64: 128, 128>}, {transform_indices = @transform_2, window_bounds = array<i64: 1, 128>}, {transform_indices = @transform_3, window_bounds = array<i64: 16, 128>}, {transform_indices = @transform_4, window_bounds = array<i64: 16, 128>}]} {
    %c0_i32 = arith.constant 0 : i32
    %0 = arith.cmpi eq, %arg2, %c0_i32 : i32
    %1 = arith.extui %0 : i1 to i32
    %c0_i32_0 = arith.constant 0 : i32
    %2 = arith.cmpi ne, %1, %c0_i32_0 : i32
    scf.if %2 {
      %cst_10 = arith.constant 0.000000e+00 : f32
      %12 = vector.broadcast %cst_10 : f32 to vector<16x128xf32>
      %c0_11 = arith.constant 0 : index
      %c0_12 = arith.constant 0 : index
      %13 = vector.load %arg8[%c0_11, %c0_12] : memref<16x128xf32, #tpu.memory_space<vmem>>, vector<16x128xf32>
      tpu.vector_store %arg8[%c0_11, %c0_12], %12 {strides = array<i32>} : memref<16x128xf32, #tpu.memory_space<vmem>>, vector<16x128xf32>,
    } else {
    }
    %c0 = arith.constant 0 : index
    %c0_1 = arith.constant 0 : index
    %3 = vector.load %arg8[%c0, %c0_1] : memref<16x128xf32, #tpu.memory_space<vmem>>, vector<16x128xf32>
    %c0_2 = arith.constant 0 : index
    %c0_3 = arith.constant 0 : index
    %4 = vector.load %arg3[%c0_2, %c0_3] : memref<16x128xbf16, #tpu.memory_space<vmem>>, vector<16x128xbf16>
    %c0_4 = arith.constant 0 : index
    %c0_5 = arith.constant 0 : index
    %5 = vector.load %arg4[%c0_4, %c0_5] : memref<128x128xbf16, #tpu.memory_space<vmem>>, vector<128x128xbf16>
    %cst = arith.constant dense<0.000000e+00> : vector<16x128xf32>
    %6 = tpu.matmul %4, %5, %cst {dimension_numbers = #tpu.dot_dimension_numbers<[1], [0], [0], [1], [0, 0, 1, 1], [], []>} : vector<16x128xbf16>, vector<128x128xbf16>, vector<16x128xf32> -> vector<16x128xf32>
    %7 = arith.addf %3, %6 : vector<16x128xf32>
    %c0_6 = arith.constant 0 : index
    %c0_7 = arith.constant 0 : index
    %8 = vector.load %arg8[%c0_6, %c0_7] : memref<16x128xf32, #tpu.memory_space<vmem>>, vector<16x128xf32>
    tpu.vector_store %arg8[%c0_6, %c0_7], %7 {strides = array<i32>} : memref<16x128xf32, #tpu.memory_space<vmem>>, vector<16x128xf32>,
    %c0_i32_8 = arith.constant 0 : i32
    %9 = arith.cmpi eq, %arg2, %c0_i32_8 : i32
    %10 = arith.extui %9 : i1 to i32
    %c0_i32_9 = arith.constant 0 : i32
    %11 = arith.cmpi ne, %10, %c0_i32_9 : i32
    scf.if %11 {
      %c0_10 = arith.constant 0 : index
      %c0_11 = arith.constant 0 : index
      %12 = vector.load %arg8[%c0_10, %c0_11] : memref<16x128xf32, #tpu.memory_space<vmem>>, vector<16x128xf32>
      %c0_12 = arith.constant 0 : index
      %c0_13 = arith.constant 0 : index
      %13 = vector.load %arg5[%c0_12, %c0_13] : memref<1x128xf32, #tpu.memory_space<vmem>>, vector<1x128xf32>
      %14 = vector.broadcast %13 : vector<1x128xf32> to vector<16x128xf32>
      %15 = arith.addf %12, %14 : vector<16x128xf32>
      %c0_14 = arith.constant 0 : index
      %c0_15 = arith.constant 0 : index
      %16 = vector.load %arg6[%c0_14, %c0_15] : memref<16x128xbf16, #tpu.memory_space<vmem>>, vector<16x128xbf16>
      %17 = arith.extf %16 : vector<16x128xbf16> to vector<16x128xf32>
      %18 = arith.addf %15, %17 : vector<16x128xf32>
      %19 = arith.truncf %18 : vector<16x128xf32> to vector<16x128xbf16>
      %c0_16 = arith.constant 0 : index
      %c0_17 = arith.constant 0 : index
      %20 = vector.load %arg7[%c0_16, %c0_17] : memref<16x128xbf16, #tpu.memory_space<vmem>>, vector<16x128xbf16>
      tpu.vector_store %arg7[%c0_16, %c0_17], %19 {strides = array<i32>} : memref<16x128xbf16, #tpu.memory_space<vmem>>, vector<16x128xbf16>,
    } else {
    }
    return
  }
  func.func @transform_0(%arg0: i32, %arg1: i32, %arg2: i32) -> (i32, i32) {
    %c0_i32 = arith.constant 0 : i32
    return %arg0, %arg2 : i32, i32
  }
  func.func @transform_1(%arg0: i32, %arg1: i32, %arg2: i32) -> (i32, i32) {
    %c0_i32 = arith.constant 0 : i32
    return %arg2, %arg1 : i32, i32
  }
  func.func @transform_2(%arg0: i32, %arg1: i32, %arg2: i32) -> (i32, i32) {
    %c0_i32 = arith.constant 0 : i32
    %c0_i32_0 = arith.constant 0 : i32
    return %c0_i32, %arg1 : i32, i32
  }
  func.func @transform_3(%arg0: i32, %arg1: i32, %arg2: i32) -> (i32, i32) {
    %c0_i32 = arith.constant 0 : i32
    return %arg0, %arg1 : i32, i32
  }
  func.func @transform_4(%arg0: i32, %arg1: i32, %arg2: i32) -> (i32, i32) {
    %c0_i32 = arith.constant 0 : i32
    return %arg0, %arg1 : i32, i32
  }
}

module attributes {stable_mosaic.version = 11 : i64} {
  func.func @_gemm_kernel(%arg0: i32, %arg1: i32, %arg2: i32, %arg3: memref<16x32xbf16, #tpu.memory_space<vmem>>, %arg4: memref<32x128xbf16, #tpu.memory_space<vmem>>, %arg5: memref<16x128xf32, #tpu.memory_space<vmem>>, %arg6: memref<16x128xf32, #tpu.memory_space<vmem>>) attributes {dimension_semantics = [#tpu.dimension_semantics<parallel>, #tpu.dimension_semantics<parallel>, #tpu.dimension_semantics<arbitrary>], iteration_bounds = array<i64: 1, 1, 1>, scalar_prefetch = 0 : i64, scratch_operands = 1 : i64, tpu.core_type = #tpu.core_type<tc>, window_params = [{transform_indices = @transform_0, window_bounds = array<i64: 16, 32>}, {transform_indices = @transform_1, window_bounds = array<i64: 32, 128>}, {transform_indices = @transform_2, window_bounds = array<i64: 16, 128>}]} {
    %c0_i32 = arith.constant 0 : i32
    %0 = arith.cmpi eq, %arg2, %c0_i32 : i32
    %1 = arith.extui %0 : i1 to i32
    %c0_i32_0 = arith.constant 0 : i32
    %2 = arith.cmpi ne, %1, %c0_i32_0 : i32
    scf.if %2 {
      %cst_10 = arith.constant 0.000000e+00 : f32
      %12 = vector.broadcast %cst_10 : f32 to vector<16x128xf32>
      %c0_11 = arith.constant 0 : index
      %c0_12 = arith.constant 0 : index
      %13 = vector.load %arg6[%c0_11, %c0_12] : memref<16x128xf32, #tpu.memory_space<vmem>>, vector<16x128xf32>
      tpu.vector_store %arg6[%c0_11, %c0_12], %12 {strides = array<i32>} : memref<16x128xf32, #tpu.memory_space<vmem>>, vector<16x128xf32>,
    } else {
    }
    %c0 = arith.constant 0 : index
    %c0_1 = arith.constant 0 : index
    %3 = vector.load %arg6[%c0, %c0_1] : memref<16x128xf32, #tpu.memory_space<vmem>>, vector<16x128xf32>
    %c0_2 = arith.constant 0 : index
    %c0_3 = arith.constant 0 : index
    %4 = vector.load %arg3[%c0_2, %c0_3] : memref<16x32xbf16, #tpu.memory_space<vmem>>, vector<16x32xbf16>
    %c0_4 = arith.constant 0 : index
    %c0_5 = arith.constant 0 : index
    %5 = vector.load %arg4[%c0_4, %c0_5] : memref<32x128xbf16, #tpu.memory_space<vmem>>, vector<32x128xbf16>
    %cst = arith.constant dense<0.000000e+00> : vector<16x128xf32>
    %6 = tpu.matmul %4, %5, %cst {dimension_numbers = #tpu.dot_dimension_numbers<[1], [0], [0], [1], [0, 0, 1, 1], [], []>} : vector<16x32xbf16>, vector<32x128xbf16>, vector<16x128xf32> -> vector<16x128xf32>
    %7 = arith.addf %3, %6 : vector<16x128xf32>
    %c0_6 = arith.constant 0 : index
    %c0_7 = arith.constant 0 : index
    %8 = vector.load %arg6[%c0_6, %c0_7] : memref<16x128xf32, #tpu.memory_space<vmem>>, vector<16x128xf32>
    tpu.vector_store %arg6[%c0_6, %c0_7], %7 {strides = array<i32>} : memref<16x128xf32, #tpu.memory_space<vmem>>, vector<16x128xf32>,
    %c0_i32_8 = arith.constant 0 : i32
    %9 = arith.cmpi eq, %arg2, %c0_i32_8 : i32
    %10 = arith.extui %9 : i1 to i32
    %c0_i32_9 = arith.constant 0 : i32
    %11 = arith.cmpi ne, %10, %c0_i32_9 : i32
    scf.if %11 {
      %c0_10 = arith.constant 0 : index
      %c0_11 = arith.constant 0 : index
      %12 = vector.load %arg6[%c0_10, %c0_11] : memref<16x128xf32, #tpu.memory_space<vmem>>, vector<16x128xf32>
      %c0_12 = arith.constant 0 : index
      %c0_13 = arith.constant 0 : index
      %13 = vector.load %arg5[%c0_12, %c0_13] : memref<16x128xf32, #tpu.memory_space<vmem>>, vector<16x128xf32>
      tpu.vector_store %arg5[%c0_12, %c0_13], %12 {strides = array<i32>} : memref<16x128xf32, #tpu.memory_space<vmem>>, vector<16x128xf32>,
    } else {
    }
    return
  }
  func.func @transform_0(%arg0: i32, %arg1: i32, %arg2: i32) -> (i32, i32) {
    %c0_i32 = arith.constant 0 : i32
    return %arg0, %arg2 : i32, i32
  }
  func.func @transform_1(%arg0: i32, %arg1: i32, %arg2: i32) -> (i32, i32) {
    %c0_i32 = arith.constant 0 : i32
    return %arg2, %arg1 : i32, i32
  }
  func.func @transform_2(%arg0: i32, %arg1: i32, %arg2: i32) -> (i32, i32) {
    %c0_i32 = arith.constant 0 : i32
    return %arg0, %arg1 : i32, i32
  }
}

</mosaic_0001>

<bundles_post_ra>
// kernel: gpt3_forward.16
= control target key start
LH: loop header
LB: loop body
LE: loop exit
PB: predicated region body
PF: predicated region fallthrough
CT: control target
= control target key end

     0   :  { %vm18_vm0 = vcmask 261120   ;;  %v104_v5 = vmov 32.0   ;;  %vm84_vm6 = vcmask 257024   ;;  %s144_s0 = inlined_call_operand.vmem [shape: bf16[16,32], index: 0, kind: input, shape index: {}]   ;;  %s145_s1 = inlined_call_operand.vmem [shape: f32[1,32], index: 1, kind: input, shape index: {}]   ;;  %s146_s2 = inlined_call_operand.vmem [shape: f32[1,32], index: 2, kind: input, shape index: {}]   ;;  %s147_s3 = inlined_call_operand.vmem [shape: bf16[16,32], index: 3, kind: output, shape index: {}]  }
   0x1   :  { %v92_v0 = vld [vmem:[%s144_s0] sm:$0xff]   ;;  %98 = vrcp.f32 %v104_v5 }
   0x2   :  { %v93_v1 = vunpack.c.l.bf16 %v92_v0  ;;  %v94_v3 = vunpack.c.h.bf16 %v92_v0  ;;  %v96_v36 = vld [vmem:[%s145_s1] ss:$0 sm:$0xff] }
   0x3   :  { %v97_v39 = vld [vmem:[%s146_s2] ss:$0 sm:$0xff] }
   0x4   :  { %v19_v2 = vsel %vm18_vm0, %v93_v1, 0.0  ;;  %v22_v4 = vsel %vm18_vm0, %v94_v3, 0.0 }
   0x5   :  { %20 = vadd.xlane.f32.xlu0 %v19_v2 }
   0x7   :  { %v99_v6 = vpop.eup %98 }
   0x8   :  { %v26_v7 = vmul.f32 32.0, %v99_v6  ;;  %vm30_vm1 = vweird.f32 %v99_v6 }
   0xa   :  { %v27_v8 = vsub.f32 1.0, %v26_v7 }
   0xc   :  { %v28_v9 = vmul.f32 %v99_v6, %v27_v8 }
   0xd   :  { %23 = vadd.xlane.f32.xlu0 %v22_v4 }
   0xe   :  { %v29_v10 = vadd.f32 %v99_v6, %v28_v9 }
  0x10   :  { %v31_v11 = vsel %vm30_vm1, %v99_v6, %v29_v10 }
  0x78   :  { %v21_v12 = vpop.xlane.xlu0 %20 }
  0x79   :  { %v32_v13 = vmul.f32 %v31_v11, %v21_v12 }
  0x7b   :  { %v34_v14 = vsub.f32 %v93_v1, %v32_v13 }
  0x7d   :  { %v36_v15 = vmul.f32 %v34_v14, %v34_v14 }
  0x7f   :  { %v38_v16 = vsel %vm18_vm0, %v36_v15, 0.0 }
  0x80   :  { %39 = vadd.xlane.f32.xlu1 %v38_v16  ;;  %v24_v17 = vpop.xlane.xlu0 %23 }
  0x81   :  { %v33_v18 = vmul.f32 %v31_v11, %v24_v17 }
  0x83   :  { %v35_v19 = vsub.f32 %v94_v3, %v33_v18 }
  0x85   :  { %v37_v20 = vmul.f32 %v35_v19, %v35_v19 }
  0x87   :  { %v41_v21 = vsel %vm18_vm0, %v37_v20, 0.0 }
  0x88   :  { %42 = vadd.xlane.f32.xlu1 %v41_v21 }
  0xf3   :  { %v40_v22 = vpop.xlane.xlu1 %39 }
  0xf4   :  { %v44_v23 = vmul.f32 %v40_v22, %v31_v11 }
  0xf6   :  { %v46_v24 = vadd.f32 1e-05, %v44_v23 }
  0xf8   :  { %100 = vrsqrt.f32 %v46_v24  ;;  %vm54_vm3 = vweird.f32 %v46_v24 }
  0xfb   :  { %v43_v25 = vpop.xlane.xlu1 %42 }
  0xfc   :  { %v45_v26 = vmul.f32 %v43_v25, %v31_v11 }
  0xfe   :  { %v101_v27 = vpop.eup %100  ;;  %v47_v28 = vadd.f32 1e-05, %v45_v26 }
  0xff   :  { %v49_v29 = vmul.f32 %v101_v27, %v46_v24  ;;  %vm55_vm2 = vweird.f32 %v101_v27 }
 0x100   :  { %102 = vrsqrt.f32 %v47_v28  ;;  %vm56_vm4 = vmor %vm54_vm3, %vm55_vm2  ;;  %vm64_vm7 = vweird.f32 %v47_v28 }
 0x101   :  { %v50_v30 = vmul.f32 %v101_v27, %v49_v29 }
 0x103   :  { %v51_v31 = vmul.f32 0.5, %v50_v30 }
 0x105   :  { %v52_v32 = vsub.f32 1.5, %v51_v31 }
 0x106   :  { %v103_v33 = vpop.eup %102 }
 0x107   :  { %v53_v34 = vmul.f32 %v101_v27, %v52_v32  ;;  %v59_v35 = vmul.f32 %v103_v33, %v47_v28  ;;  %vm65_vm5 = vweird.f32 %v103_v33 }
 0x108   :  { %vm66_vm8 = vmor %vm64_vm7, %vm65_vm5 }
 0x109   :  { %v57_v37 = vsel %vm56_vm4, %v101_v27, %v53_v34  ;;  %v60_v38 = vmul.f32 %v103_v33, %v59_v35 }
 0x10a   :  { %v68_v40 = vmul.f32 %v57_v37, %v34_v14 }
 0x10b   :  { %v61_v41 = vmul.f32 0.5, %v60_v38 }
 0x10c   :  { %v74_v42 = vmul.f32 %v96_v36, %v68_v40 }
 0x10d   :  { %v62_v43 = vsub.f32 1.5, %v61_v41 }
 0x10e   :  { %v80_v44 = vadd.f32 %v97_v39, %v74_v42 }
 0x10f   :  { %v63_v45 = vmul.f32 %v103_v33, %v62_v43 }
 0x110   :  { %v82_v46 = vpack.c.bf16 %v80_v44, %v80_v44 }
 0x111   :  { %v67_v47 = vsel %vm66_vm8, %v103_v33, %v63_v45 }
 0x112   :  { %85 = vst.msk [vmem:[%s147_s3] sm:$0xf] %vm84_vm6, %v82_v46  ;;  %v69_v48 = vmul.f32 %v67_v47, %v35_v19 }
 0x114   :  { %v75_v49 = vmul.f32 %v96_v36, %v69_v48 }
 0x116   :  { %v81_v50 = vadd.f32 %v97_v39, %v75_v49 }
 0x118   :  { %v83_v51 = vpack.c.bf16 %v81_v50, %v81_v50 }
 0x11a   :  { %86 = vst.msk [vmem:[%s147_s3 + $0x4] sm:$0xf] %vm84_vm6, %v83_v51 }

// kernel: gpt3_forward.17
= control target key start
LH: loop header
LB: loop body
LE: loop exit
PB: predicated region body
PF: predicated region fallthrough
CT: control target
= control target key end

     0   :  { %vm46_vm0 = vcmask 261120   ;;  %s144_s1 = inlined_call_operand.vmem [shape: bf16[32,128], index: 1, kind: input, shape index: {}]   ;;  %s145_s2 = inlined_call_operand.vmem [shape: f32[1,128], index: 2, kind: input, shape index: {}]   ;;  %s146_s0 = inlined_call_operand.vmem [shape: bf16[16,32], index: 0, kind: input, shape index: {}]   ;;  %s147_s3 = inlined_call_operand.vmem [shape: bf16[16,128], index: 3, kind: output, shape index: {}]  }
   0x1   :  { %v102_v0 = vld [vmem:[%s144_s1 + $0x8] sm:$0xff]  ;;  %v101_v1 = vld [vmem:[%s144_s1] sm:$0xff] }
   0x2   :  { %56 = vmatpush.bf16.msra.mxu0 %v102_v0  ;;  %v100_v2 = vld [vmem:[%s146_s0] sm:$0xff] }
   0x3   :  { %v108_v4 = vld [vmem:[%s145_s2] ss:$0 sm:$0xff] }
   0x6   :  { %57 = vmatpush.bf16.msra.mxu0 %v101_v1 }
   0x9   :  { %99 = vmatmul.msk.bf16.vlgmr.msra.gmra.mxu0 %vm46_vm0, %v100_v2 }
  0x86   :  { %v59_v3 = vpop.f32.mrf.mxu0 }
  0x87   :  { %v77_v6 = vadd.f32 %v108_v4, %v59_v3 }
  0x8e   :  { %v61_v5 = vpop.f32.mrf.mxu0 }
  0x8f   :  { %v78_v7 = vadd.f32 %v108_v4, %v61_v5 }
  0x91   :  { %v106_v8 = vpack.c.bf16 %v78_v7, %v77_v6 }
  0x93   :  { %107 = vst [vmem:[%s147_s3] sm:$0xff] %v106_v8  }

// kernel: gpt3_forward.18
= control target key start
LH: loop header
LB: loop body
LE: loop exit
PB: predicated region body
PF: predicated region fallthrough
CT: control target
= control target key end

     0   :  { %s887_s12 = smov 0   ;;  %s889_s13 = smov 0   ;;  %s1029_s0 = inlined_call_operand.vmem [shape: bf16[8,8,8], index: 0, kind: input, shape index: {}]   ;;  %s1030_s1 = inlined_call_operand.vmem [shape: bf16[8,8,8], index: 1, kind: input, shape index: {}]   ;;  %s1031_s2 = inlined_call_operand.vmem [shape: bf16[8,8,8], index: 2, kind: input, shape index: {}]   ;;  %s1032_s3 = inlined_call_operand.vmem [shape: bf16[8,8,8], index: 3, kind: output, shape index: {}]  }
   0x1   :  { %s891_s14 = smov 0  }
   0x2 LB: > { %s32_s15 = sadd.s32 1, %s858_s13  ;;  %p767_p0 = scmp.ge.s32.totalorder %s862_s14, 1  ;;  %s862_s14 = sphi %s891_s14, %s13_s14   ;;  %s858_s13 = sphi %s889_s13, %s1034_s13   ;;  %s854_s12 = sphi %s887_s12, %s1033_s12  }
   0x3   : > { %p34_p1 = scmp.ge.s32.totalorder %s32_s15, 2  ;;  %p196_p2 = scmp.lt.s32.totalorder %s862_s14, 3 }
   0x5   : > { %s1036_s15 = smov (%p34_p1, %s32_s15), 0  ;;  %p197_p3 = pnand %p767_p0, %p196_p2 }
   0x6   : > { %s768_s16 = sshll.u32 (!%p197_p3), %s854_s12, 2 }
   0x7   : > { %200 = sbr.rel (%p197_p3) target bundleno = 700 (0x2bc), region = 32  ;;  %p243_p4 = scmp.lt.s32.totalorder (!%p197_p3), %s768_s16, 7 }
   0xc   : > { %s1038_s16 = smov (!%p243_p4, %s768_s16), 7  ;;  %vm292_vm0 = vcmask 64512   ;;  %vm283_vm1 = vcmask 7168   ;;  %v864_v12 = vmov -inf   ;;  %v865_v29 = vmov 0  }
   0xd   : > { %s905_s17 = sshll.u32 %s1038_s16, 2  ;;  %284 = vst.msk [vmem:[#allocation2] sm:$0xff] %vm283_vm1, %v864_v12  ;;  %814 = vset.pattern.permute.xlu0 %v865_v29  ;;  %813 = vset.pattern.permute.xlu2 %v865_v29  ;;  %v866_v30 = vmov 0.0   ;;  %vm518_vm2 = vcmask 1043456   ;;  %vm647_vm3 = vcmask 60416  }
   0xe   : > { %s258_s20 = scalar_lea.vmem %s1030_s1, %s905_s17  ;;  %s249_s23 = scalar_lea.vmem %s1029_s0, %s905_s17  ;;  %285 = vst.msk [vmem:[#allocation2 + $0x8] sm:$0xff] %vm283_vm1, %v864_v12  ;;  %815 = vset.pattern.permute.xlu1 %v865_v29 }
   0xf   : > { %v301_v0 = vld [vmem:[%s258_s20] sm:$0xf]  ;;  %v303_v1 = vld [vmem:[%s258_s20 + $0x8] sm:$0xf]  ;;  %v302_v4 = vld [vmem:[%s258_s20 + $0x4] sm:$0xf]  ;;  %s267_s26 = scalar_lea.vmem %s1031_s2, %s905_s17  ;;  %s276_s29 = scalar_lea.vmem %s1032_s3, %s905_s17 }
  0x10   : > { %v314_v2 = vsel %vm292_vm0, %v301_v0, 0  ;;  %v352_v3 = vsel %vm292_vm0, %v303_v1, 0  ;;  %v333_v5 = vsel %vm292_vm0, %v302_v4, 0  ;;  %v304_v6 = vld [vmem:[%s258_s20 + $0xc] sm:$0xf]  ;;  %286 = vst.msk [vmem:[#allocation2 + $0x10] sm:$0xff] %vm283_vm1, %v864_v12 }
  0x11   : > { %323 = vmatpush.bf16.xpose.msra.mxu0 %v314_v2  ;;  %361 = vmatpush.bf16.xpose.msra.mxu2 %v352_v3  ;;  %v371_v7 = vsel %vm292_vm0, %v304_v6, 0  ;;  %v297_v8 = vld [vmem:[%s249_s23] sm:$0xf]  ;;  %v299_v9 = vld [vmem:[%s249_s23 + $0x8] sm:$0xf]  ;;  %287 = vst.msk [vmem:[#allocation2 + $0x18] sm:$0xff] %vm283_vm1, %v864_v12 }
  0x12   : > { %342 = vmatpush.bf16.xpose.msra.mxu1 %v333_v5  ;;  %380 = vmatpush.bf16.xpose.msra.mxu3 %v371_v7  ;;  %v298_v10 = vld [vmem:[%s249_s23 + $0x4] sm:$0xf]  ;;  %v300_v11 = vld [vmem:[%s249_s23 + $0xc] sm:$0xf]  ;;  %290 = vst.msk [vmem:[#allocation3 + $0x10] sm:$0xff] %vm283_vm1, %v866_v30 }
  0x13   : > { %288 = vst.msk [vmem:[#allocation3] sm:$0xff] %vm283_vm1, %v866_v30  ;;  %v307_v47 = vld [vmem:[%s267_s26 + $0x8] sm:$0xf]  ;;  %v308_v49 = vld [vmem:[%s267_s26 + $0xc] sm:$0xf] }
  0x14   : > { %289 = vst.msk [vmem:[#allocation3 + $0x8] sm:$0xff] %vm283_vm1, %v866_v30  ;;  %v951_v31 = vld [vmem:[#allocation2] sm:$0xff]  ;;  %v558_v48 = vsel %vm518_vm2, %v307_v47, 0  ;;  %v577_v50 = vsel %vm518_vm2, %v308_v49, 0 }
  0x15   : > { %291 = vst.msk [vmem:[#allocation3 + $0x18] sm:$0xff] %vm283_vm1, %v866_v30  ;;  %v963_v37 = vld [vmem:[#allocation2 + $0x8] sm:$0xff]  ;;  %v305_v51 = vld [vmem:[%s267_s26] sm:$0xf]  ;;  %v306_v54 = vld [vmem:[%s267_s26 + $0x4] sm:$0xf] }
  0x16   : > { %293 = vst.msk [vmem:[#allocation4] sm:$0xff] %vm292_vm0, %v866_v30  ;;  %v520_v52 = vsel %vm518_vm2, %v305_v51, 0  ;;  %v539_v56 = vsel %vm518_vm2, %v306_v54, 0 }
  0x17   : > { %294 = vst.msk [vmem:[#allocation4 + $0x8] sm:$0xff] %vm292_vm0, %v866_v30  ;;  %v961_v35 = vld [vmem:[#allocation2 + $0x10] sm:$0xff] }
  0x18   : > { %776 = vmatmul.msk.bf16.vlgmr.msra.gmra.mxu0 %vm292_vm0, %v297_v8  ;;  %778 = vmatmul.msk.bf16.vlgmr.msra.gmra.mxu2 %vm292_vm0, %v299_v9  ;;  %295 = vst.msk [vmem:[#allocation4 + $0x10] sm:$0xff] %vm292_vm0, %v866_v30  ;;  %v976_v43 = vld [vmem:[#allocation2 + $0x18] sm:$0xff] }
  0x19   : > { %777 = vmatmul.msk.bf16.vlgmr.msra.gmra.mxu1 %vm292_vm0, %v298_v10  ;;  %779 = vmatmul.msk.bf16.vlgmr.msra.gmra.mxu3 %vm292_vm0, %v300_v11  ;;  %296 = vst.msk [vmem:[#allocation4 + $0x18] sm:$0xff] %vm292_vm0, %v866_v30 }
  0x1a   : > { %567 = vmatpush.bf16.msrb.mxu2 %v558_v48  ;;  %586 = vmatpush.bf16.msrb.mxu3 %v577_v50 }
  0x1b   : > { %529 = vmatpush.bf16.msrb.mxu0 %v520_v52  ;;  %548 = vmatpush.bf16.msrb.mxu1 %v539_v56 }
  0x95   : > { %v325_v13 = vpop.f32.mrf.mxu0 }
  0x96   : > { %v927_v14 = vmul.f32 0.35355338, %v325_v13  ;;  %v344_v15 = vpop.f32.mrf.mxu1 }
  0x97   : > { %v931_v17 = vmul.f32 0.35355338, %v344_v15 }
  0x98   : > { %v394_v16 = vsel %vm292_vm0, %v927_v14, -inf }
  0x99   : > { %395 = vmax.xlane.f32.xlu1 %v394_v16  ;;  %v397_v23 = vsel %vm292_vm0, %v931_v17, -inf }
  0x9b   : > { %v363_v18 = vpop.f32.mrf.mxu2 }
  0x9c   : > { %v933_v19 = vmul.f32 0.35355338, %v363_v18  ;;  %v382_v21 = vpop.f32.mrf.mxu3 }
  0x9d   : > { %v327_v20 = vpop.f32.mrf.mxu0  ;;  %v939_v25 = vmul.f32 0.35355338, %v382_v21 }
  0x9e   : > { %v400_v22 = vsel %vm292_vm0, %v933_v19, -inf  ;;  %v346_v24 = vpop.f32.mrf.mxu1 }
  0x9f   : > { %401 = vmax.xlane.f32.xlu0 %v400_v22  ;;  %v403_v27 = vsel %vm292_vm0, %v939_v25, -inf  ;;  %v456_v22 = vld [vmem:[#allocation3 + $0x10] sm:$0xff] }
  0xa1   : > { %398 = vmax.xlane.f32.xlu1 %v397_v23 }
  0xa3   : > { %v365_v26 = vpop.f32.mrf.mxu2 }
  0xa4   : > { %v384_v28 = vpop.f32.mrf.mxu3 }
  0xa5   : > { %v454_v28 = vld [vmem:[#allocation3] sm:$0xff] }
  0xa7   : > { %404 = vmax.xlane.f32.xlu0 %v403_v27 }
 0x10c   : > { %v396_v32 = vpop.xlane.xlu1 %395 }
 0x10d   : > { %v954_v33 = vmax.f32 %v951_v31, %v396_v32 }
 0x10f   : > { %v410_v34 = vsub.f32 %v951_v31, %v954_v33  ;;  %600 = vst.msk [vmem:[#allocation2] sm:$0xff] %vm283_vm1, %v954_v33  ;;  %424 = vperm.xlu0 %814, %v954_v33  }
 0x112   : > { %v402_v36 = vpop.xlane.xlu0 %401 }
 0x113   : > { %v966_v38 = vmax.f32 %v961_v35, %v402_v36 }
 0x114   : > { %v399_v39 = vpop.xlane.xlu1 %398 }
 0x115   : > { %v412_v40 = vsub.f32 %v961_v35, %v966_v38  ;;  %602 = vst.msk [vmem:[#allocation2 + $0x10] sm:$0xff] %vm283_vm1, %v966_v38  ;;  %v407_v41 = vmax.f32 %v963_v37, %v399_v39  ;;  %434 = vperm.xlu2 %813, %v966_v38   ;;  %v483_v35 = vld [vmem:[#allocation4] sm:$0xff] }
 0x117   : > { %v411_v42 = vsub.f32 %v963_v37, %v407_v41  ;;  %601 = vst.msk [vmem:[#allocation2 + $0x8] sm:$0xff] %vm283_vm1, %v407_v41  ;;  %429 = vperm.xlu1 %815, %v407_v41   ;;  %v418_v15 = vmul.f32 1.442695, %v412_v40 }
 0x119   : > { %v416_v16 = vmul.f32 1.442695, %v411_v42 }
 0x11a   : > { %v405_v44 = vpop.xlane.xlu0 %404 }
 0x11b   : > { %v979_v45 = vmax.f32 %v976_v43, %v405_v44 }
 0x11d   : > { %v413_v46 = vsub.f32 %v976_v43, %v979_v45  ;;  %603 = vst.msk [vmem:[#allocation2 + $0x18] sm:$0xff] %vm283_vm1, %v979_v45  ;;  %439 = vperm.xlu2 %813, %v979_v45  }
 0x11f   : > { %v420_v21 = vmul.f32 1.442695, %v413_v46  ;;  %v485_v46 = vld [vmem:[#allocation4 + $0x10] sm:$0xff] }
 0x16f   : > { %v435_v53 = vpop.permute.xlu2 %434 }
 0x170   : > { %v444_v55 = vsub.f32 %v933_v19, %v435_v53 }
 0x172   : > { %v450_v57 = vmul.f32 1.442695, %v444_v55 }
 0x174   : > { %816 = vpow2.f32 %v450_v57  ;;  %v484_v57 = vld [vmem:[#allocation4 + $0x8] sm:$0xff] }
 0x177   : > { %v440_v58 = vpop.permute.xlu2 %439 }
 0x178   : > { %v445_v59 = vsub.f32 %v939_v25, %v440_v58 }
 0x17a   : > { %v817_v60 = vpop.eup %816  ;;  %v452_v61 = vmul.f32 1.442695, %v445_v59 }
 0x17b   : > { %v468_v62 = vsel %vm292_vm0, %v817_v60, 0.0  ;;  %v513_v63 = vpack.c.bf16 %v817_v60, %v817_v60 }
 0x17c   : > { %818 = vpow2.f32 %v452_v61  ;;  %469 = vadd.xlane.f32.xlu0 %v468_v62  ;;  %v457_v61 = vld [vmem:[#allocation3 + $0x18] sm:$0xff] }
 0x17d   : > { %782 = vmatmul.msk.bf16.vlgmr.msrb.gmra.mxu2 %vm292_vm0, %v513_v63 }
 0x181   : > { %v425_v0 = vpop.permute.xlu0 %424 }
 0x182   : > { %v819_v1 = vpop.eup %818  ;;  %v442_v2 = vsub.f32 %v927_v14, %v425_v0  ;;  %v414_v14 = vmul.f32 1.442695, %v410_v34  ;;  %v455_v34 = vld [vmem:[#allocation3 + $0x8] sm:$0xff] }
 0x183   : > { %v514_v3 = vpack.c.bf16 %v819_v1, %v819_v1  ;;  %v471_v20 = vsel %vm292_vm0, %v819_v1, 0.0  ;;  %v486_v1 = vld [vmem:[#allocation4 + $0x18] sm:$0xff] }
 0x184   : > { %v446_v4 = vmul.f32 1.442695, %v442_v2 }
 0x185   : > { %783 = vmatmul.msk.bf16.vlgmr.msrb.gmra.mxu3 %vm292_vm0, %v514_v3 }
 0x186   : > { %820 = vpow2.f32 %v446_v4 }
 0x189   : > { %v430_v5 = vpop.permute.xlu1 %429 }
 0x18a   : > { %v443_v6 = vsub.f32 %v931_v17, %v430_v5 }
 0x18c   : > { %v821_v7 = vpop.eup %820  ;;  %v448_v8 = vmul.f32 1.442695, %v443_v6 }
 0x18d   : > { %v462_v9 = vsel %vm292_vm0, %v821_v7, 0.0  ;;  %v511_v10 = vpack.c.bf16 %v821_v7, %v821_v7 }
 0x18e   : > { %822 = vpow2.f32 %v448_v8  ;;  %463 = vadd.xlane.f32.xlu2 %v462_v9 }
 0x18f   : > { %780 = vmatmul.msk.bf16.vlgmr.msrb.gmra.mxu0 %vm292_vm0, %v511_v10  ;;  %824 = vpow2.f32 %v414_v14 }
 0x190   : > { %826 = vpow2.f32 %v418_v15 }
 0x191   : > { %828 = vpow2.f32 %v416_v16 }
 0x192   : > { %830 = vpow2.f32 %v420_v21 }
 0x194   : > { %v823_v11 = vpop.eup %822 }
 0x195   : > { %v465_v12 = vsel %vm292_vm0, %v823_v11, 0.0  ;;  %v512_v13 = vpack.c.bf16 %v823_v11, %v823_v11  ;;  %v825_v17 = vpop.eup %824 }
 0x196   : > { %466 = vadd.xlane.f32.xlu1 %v465_v12  ;;  %v827_v18 = vpop.eup %826  ;;  %v458_v31 = vmul.f32 %v825_v17, %v454_v28 }
 0x197   : > { %781 = vmatmul.msk.bf16.vlgmr.msrb.gmra.mxu1 %vm292_vm0, %v512_v13  ;;  %v829_v19 = vpop.eup %828  ;;  %v460_v24 = vmul.f32 %v827_v18, %v456_v22 }
 0x198   : > { %v831_v23 = vpop.eup %830  ;;  %v459_v38 = vmul.f32 %v829_v19, %v455_v34 }
 0x199   : > { %v461_v62 = vmul.f32 %v831_v23, %v457_v61 }
 0x1a6   : > { %489 = vperm.xlu2 %813, %v825_v17  }
 0x1ae   : > { %499 = vperm.xlu2 %813, %v827_v18  }
 0x1af   : > { %494 = vperm.xlu1 %815, %v829_v19  }
 0x1d7   : > { %472 = vadd.xlane.f32.xlu2 %v471_v20 }
 0x1ef   : > { %v470_v25 = vpop.xlane.xlu0 %469  ;;  %504 = vperm.xlu2 %813, %v831_v23  }
 0x1f0   : > { %v476_v26 = vadd.f32 %v470_v25, %v460_v24 }
 0x1f2   : > { %481 = vst.msk [vmem:[#allocation3 + $0x10] sm:$0xff] %vm283_vm1, %v476_v26 }
 0x1f9   : > { %v613_v27 = vld [vmem:[#allocation3 + $0x10] sm:$0xff] }
 0x1fa   : > { %832 = vrcp.f32 %v613_v27 }
 0x200   : > { %v833_v29 = vpop.eup %832  ;;  %v569_v30 = vpop.f32.mrf.mxu2 }
 0x201   : > { %v464_v32 = vpop.xlane.xlu2 %463  ;;  %631 = vperm.xlu1 %815, %v833_v29  }
 0x202   : > { %v474_v33 = vadd.f32 %v464_v32, %v458_v31 }
 0x204   : > { %479 = vst.msk [vmem:[#allocation3] sm:$0xff] %vm283_vm1, %v474_v33 }
 0x208   : > { %v571_v36 = vpop.f32.mrf.mxu2  ;;  %v588_v37 = vpop.f32.mrf.mxu3 }
 0x209   : > { %v490_v39 = vpop.permute.xlu2 %489  ;;  %v467_v40 = vpop.xlane.xlu1 %466 }
 0x20a   : > { %v507_v41 = vmul.f32 %v490_v39, %v483_v35  ;;  %v475_v42 = vadd.f32 %v467_v40, %v459_v38 }
 0x20b   : > { %v611_v43 = vld [vmem:[#allocation3] sm:$0xff] }
 0x20c   : > { %480 = vst.msk [vmem:[#allocation3 + $0x8] sm:$0xff] %vm283_vm1, %v475_v42  ;;  %v531_v44 = vpop.f32.mrf.mxu0  ;;  %834 = vrcp.f32 %v611_v43 }
 0x20d   : > { %v592_v45 = vadd.f32 %v531_v44, %v507_v41 }
 0x20f   : > { %596 = vst.msk [vmem:[#allocation4] sm:$0xff] %vm292_vm0, %v592_v45 }
 0x210   : > { %v590_v47 = vpop.f32.mrf.mxu3 }
 0x211   : > { %v500_v48 = vpop.permute.xlu2 %499 }
 0x212   : > { %v835_v49 = vpop.eup %834  ;;  %v509_v50 = vmul.f32 %v500_v48, %v485_v46 }
 0x213   : > { %621 = vperm.xlu0 %814, %v835_v49   ;;  %v612_v51 = vld [vmem:[#allocation3 + $0x8] sm:$0xff] }
 0x214   : > { %v594_v52 = vadd.f32 %v569_v30, %v509_v50  ;;  %v533_v53 = vpop.f32.mrf.mxu0  ;;  %v550_v54 = vpop.f32.mrf.mxu1  ;;  %836 = vrcp.f32 %v612_v51 }
 0x216   : > { %598 = vst.msk [vmem:[#allocation4 + $0x10] sm:$0xff] %vm292_vm0, %v594_v52  ;;  %v607_v13 = vld [vmem:[#allocation4] sm:$0xff] }
 0x21a   : > { %v837_v55 = vpop.eup %836 }
 0x21b   : > { %626 = vperm.xlu2 %813, %v837_v55  }
 0x21c   : > { %v552_v56 = vpop.f32.mrf.mxu1 }
 0x21d   : > { %v609_v10 = vld [vmem:[#allocation4 + $0x10] sm:$0xff] }
 0x221   : > { %v495_v58 = vpop.permute.xlu1 %494 }
 0x222   : > { %v508_v59 = vmul.f32 %v495_v58, %v484_v57 }
 0x224   : > { %v593_v60 = vadd.f32 %v550_v54, %v508_v59 }
 0x226   : > { %597 = vst.msk [vmem:[#allocation4 + $0x8] sm:$0xff] %vm292_vm0, %v593_v60 }
 0x22d   : > { %v608_v9 = vld [vmem:[#allocation4 + $0x8] sm:$0xff] }
 0x24a   : > { %v473_v63 = vpop.xlane.xlu2 %472 }
 0x24b   : > { %v477_v0 = vadd.f32 %v473_v63, %v461_v62 }
 0x24d   : > { %482 = vst.msk [vmem:[#allocation3 + $0x18] sm:$0xff] %vm283_vm1, %v477_v0 }
 0x252   : > { %v505_v2 = vpop.permute.xlu2 %504 }
 0x253   : > { %v510_v3 = vmul.f32 %v505_v2, %v486_v1 }
 0x254   : > { %v614_v4 = vld [vmem:[#allocation3 + $0x18] sm:$0xff] }
 0x255   : > { %v595_v5 = vadd.f32 %v588_v37, %v510_v3  ;;  %838 = vrcp.f32 %v614_v4 }
 0x257   : > { %599 = vst.msk [vmem:[#allocation4 + $0x18] sm:$0xff] %vm292_vm0, %v595_v5 }
 0x25b   : > { %v839_v6 = vpop.eup %838 }
 0x25c   : > { %636 = vperm.xlu2 %813, %v839_v6  }
 0x25e   : > { %v610_v19 = vld [vmem:[#allocation4 + $0x18] sm:$0xff] }
 0x273   : > { %v632_v8 = vpop.permute.xlu1 %631 }
 0x274   : > { %v641_v14 = vmul.f32 %v632_v8, %v609_v10 }
 0x275   : > { %v627_v7 = vpop.permute.xlu2 %626 }
 0x276   : > { %v640_v11 = vmul.f32 %v627_v7, %v608_v9  ;;  %v645_v18 = vpack.c.bf16 %v641_v14, %v641_v14 }
 0x278   : > { %v644_v17 = vpack.c.bf16 %v640_v11, %v640_v11  ;;  %650 = vst.msk [vmem:[%s276_s29 + $0x8] sm:$0xf] %vm647_vm3, %v645_v18 }
 0x27a   : > { %649 = vst.msk [vmem:[%s276_s29 + $0x4] sm:$0xf] %vm647_vm3, %v644_v17 }
 0x285   : > { %v622_v12 = vpop.permute.xlu0 %621 }
 0x286   : > { %v639_v15 = vmul.f32 %v622_v12, %v607_v13 }
 0x288   : > { %v643_v16 = vpack.c.bf16 %v639_v15, %v639_v15 }
 0x28a   : > { %648 = vst.msk [vmem:[%s276_s29] sm:$0xf] %vm647_vm3, %v643_v16 }
 0x2b6   : > { %v637_v20 = vpop.permute.xlu2 %636 }
 0x2b7   : > { %v642_v21 = vmul.f32 %v637_v20, %v610_v19 }
 0x2b9   : > { %v646_v22 = vpack.c.bf16 %v642_v21, %v642_v21 }
 0x2bb   : > { %651 = vst.msk [vmem:[%s276_s29 + $0xc] sm:$0xf] %vm647_vm3, %v646_v22 }
 0x2bc PF: > { %s13_s14 = sadd.s32 1, %s862_s14   ;;  %s1033_s12 = smov %s858_s13 }
 0x2bd   : > { %p10_p5 = scmp.ge.s32.totalorder %s13_s14, 4   ;;  %s1034_s13 = smov %s1036_s15 }
 0x2bf   :  { %12 = sbr.rel (!%p10_p5) target bundleno = 2 (0x2), region = 76 }

// kernel: gpt3_forward.19
= control target key start
LH: loop header
LB: loop body
LE: loop exit
PB: predicated region body
PF: predicated region fallthrough
CT: control target
= control target key end

     0   :  { %vm49_vm0 = vcmask 261120   ;;  %s165_s1 = inlined_call_operand.vmem [shape: bf16[32,128], index: 1, kind: input, shape index: {}]   ;;  %s166_s2 = inlined_call_operand.vmem [shape: f32[1,128], index: 2, kind: input, shape index: {}]   ;;  %s167_s0 = inlined_call_operand.vmem [shape: bf16[16,32], index: 0, kind: input, shape index: {}]   ;;  %s168_s3 = inlined_call_operand.vmem [shape: bf16[16,128], index: 3, kind: input, shape index: {}]   ;;  %s169_s4 = inlined_call_operand.vmem [shape: bf16[16,128], index: 4, kind: output, shape index: {}]  }
   0x1   :  { %v111_v0 = vld [vmem:[%s165_s1 + $0x8] sm:$0xff]  ;;  %v110_v1 = vld [vmem:[%s165_s1] sm:$0xff] }
   0x2   :  { %59 = vmatpush.bf16.msra.mxu0 %v111_v0  ;;  %v109_v2 = vld [vmem:[%s167_s0] sm:$0xff] }
   0x3   :  { %v121_v4 = vld [vmem:[%s166_s2] ss:$0 sm:$0xff] }
   0x4   :  { %v113_v5 = vld [vmem:[%s168_s3] sm:$0xff]  }
   0x5   :  { %v114_v7 = vunpack.c.l.bf16 %v113_v5  ;;  %v115_v8 = vunpack.c.h.bf16 %v113_v5 }
   0x6   :  { %60 = vmatpush.bf16.msra.mxu0 %v110_v1 }
   0x9   :  { %108 = vmatmul.msk.bf16.vlgmr.msra.gmra.mxu0 %vm49_vm0, %v109_v2 }
  0x86   :  { %v62_v3 = vpop.f32.mrf.mxu0 }
  0x87   :  { %v80_v6 = vadd.f32 %v121_v4, %v62_v3 }
  0x89   :  { %v86_v11 = vadd.f32 %v114_v7, %v80_v6 }
  0x8e   :  { %v64_v9 = vpop.f32.mrf.mxu0 }
  0x8f   :  { %v81_v10 = vadd.f32 %v121_v4, %v64_v9 }
  0x91   :  { %v87_v12 = vadd.f32 %v115_v8, %v81_v10 }
  0x93   :  { %v119_v13 = vpack.c.bf16 %v87_v12, %v86_v11 }
  0x95   :  { %120 = vst [vmem:[%s169_s4] sm:$0xff] %v119_v13  }

// kernel: gpt3_forward.21
= control target key start
LH: loop header
LB: loop body
LE: loop exit
PB: predicated region body
PF: predicated region fallthrough
CT: control target
= control target key end

     0   :  { %vm46_vm0 = vcmask 261120   ;;  %s256_s1 = inlined_call_operand.vmem [shape: bf16[32,128], index: 1, kind: input, shape index: {}]   ;;  %s257_s2 = inlined_call_operand.vmem [shape: f32[1,128], index: 2, kind: input, shape index: {}]   ;;  %s258_s0 = inlined_call_operand.vmem [shape: bf16[16,32], index: 0, kind: input, shape index: {}]   ;;  %s259_s3 = inlined_call_operand.vmem [shape: bf16[16,128], index: 3, kind: output, shape index: {}]  }
   0x1   :  { %v192_v0 = vld [vmem:[%s256_s1 + $0x8] sm:$0xff]  ;;  %v191_v1 = vld [vmem:[%s256_s1] sm:$0xff] }
   0x2   :  { %56 = vmatpush.bf16.msra.mxu0 %v192_v0  ;;  %v190_v2 = vld [vmem:[%s258_s0] sm:$0xff] }
   0x3   :  { %v198_v3 = vld [vmem:[%s257_s2] ss:$0 sm:$0xff] }
   0x6   :  { %57 = vmatpush.bf16.msra.mxu0 %v191_v1 }
   0x9   :  { %187 = vmatmul.msk.bf16.vlgmr.msra.gmra.mxu0 %vm46_vm0, %v190_v2 }
  0x86   :  { %v59_v4 = vpop.f32.mrf.mxu0 }
  0x87   :  { %v235_v5 = vadd.f32 %v198_v3, %v59_v4 }
  0x89   :  { %v238_v6 = vmul.f32 0.70710677, %v235_v5 }
  0x8b   :  { %v83_v7 = vmul.f32 %v238_v6, %v238_v6 }
  0x8d   :  { %v84_v8 = vmin.f32 %v83_v7, 16.0 }
  0x8e   :  { %v61_v9 = vpop.f32.mrf.mxu0 }
  0x8f   :  { %v85_v10 = vmul.f32 2.1237322e-06, %v84_v8  ;;  %v96_v11 = vmul.f32 3.8918573e-05, %v84_v8  ;;  %v242_v12 = vadd.f32 %v198_v3, %v61_v9 }
  0x91   :  { %v86_v13 = vadd.f32 0.00028619796, %v85_v10  ;;  %v97_v14 = vadd.f32 0.001143296, %v96_v11  ;;  %v245_v15 = vmul.f32 0.70710677, %v242_v12 }
  0x93   :  { %v98_v16 = vmul.f32 %v97_v14, %v84_v8  ;;  %v123_v17 = vmul.f32 %v245_v15, %v245_v15  ;;  %v87_v18 = vmul.f32 %v86_v13, %v84_v8 }
  0x95   :  { %v99_v19 = vadd.f32 0.014752088, %v98_v16  ;;  %v124_v20 = vmin.f32 %v123_v17, 16.0  ;;  %v88_v24 = vadd.f32 0.0036580483, %v87_v18 }
  0x97   :  { %v100_v21 = vmul.f32 %v99_v19, %v84_v8  ;;  %v125_v22 = vmul.f32 2.1237322e-06, %v124_v20  ;;  %v136_v23 = vmul.f32 3.8918573e-05, %v124_v20  ;;  %v89_v31 = vmul.f32 %v88_v24, %v84_v8 }
  0x99   :  { %v101_v25 = vadd.f32 0.112945676, %v100_v21  ;;  %v126_v26 = vadd.f32 0.00028619796, %v125_v22  ;;  %v137_v27 = vadd.f32 0.001143296, %v136_v23 }
  0x9a   :  { %v90_v37 = vadd.f32 0.05243302, %v89_v31  ;;  %v80_v21 = vmul.f32 0.5, %v242_v12 }
  0x9b   :  { %v102_v28 = vmul.f32 %v101_v25, %v84_v8  ;;  %v127_v29 = vmul.f32 %v126_v26, %v124_v20  ;;  %v138_v30 = vmul.f32 %v137_v27, %v124_v20 }
  0x9c   :  { %v91_v42 = vmul.f32 %v90_v37, %v84_v8 }
  0x9d   :  { %v103_v32 = vadd.f32 0.4994258, %v102_v28  ;;  %v128_v33 = vadd.f32 0.0036580483, %v127_v29  ;;  %v139_v34 = vadd.f32 0.014752088, %v138_v30 }
  0x9e   :  { %v92_v47 = vadd.f32 0.18741608, %v91_v42 }
  0x9f   :  { %v104_v35 = vmul.f32 %v103_v32, %v84_v8  ;;  %v140_v36 = vmul.f32 %v139_v34, %v124_v20  ;;  %v129_v39 = vmul.f32 %v128_v33, %v124_v20 }
  0xa0   :  { %v93_v52 = vmul.f32 %v92_v47, %v84_v8 }
  0xa1   :  { %v105_v38 = vadd.f32 1.0, %v104_v35  ;;  %v141_v40 = vadd.f32 0.112945676, %v140_v36  ;;  %v130_v43 = vadd.f32 0.05243302, %v129_v39 }
  0xa2   :  { %v94_v58 = vadd.f32 1.1283791, %v93_v52 }
  0xa3   :  { %199 = vrcp.f32 %v105_v38  ;;  %v142_v41 = vmul.f32 %v141_v40, %v124_v20  ;;  %v131_v49 = vmul.f32 %v130_v43, %v124_v20  ;;  %v117_v54 = vand.u32 2147483648, %v105_v38 }
  0xa4   :  { %v115_v56 = vand.u32 2147483647, %v105_v38  ;;  %vm111_vm2 = vweird.f32 %v105_v38  ;;  %v95_v1 = vmul.f32 %v94_v58, %v238_v6 }
  0xa5   :  { %v143_v44 = vadd.f32 0.4994258, %v142_v41  ;;  %v132_v55 = vadd.f32 0.18741608, %v131_v49  ;;  %v118_v61 = vor.u32 1.1754944e-38, %v117_v54 }
  0xa6   :  { %vm116_vm4 = vcmp.eq.f32.partialorder %v115_v56, 8.507059e+37 }
  0xa7   :  { %v144_v45 = vmul.f32 %v143_v44, %v124_v20  ;;  %v133_v62 = vmul.f32 %v132_v55, %v124_v20  ;;  %v79_v20 = vmul.f32 0.5, %v235_v5 }
  0xa9   :  { %v200_v46 = vpop.eup %199  ;;  %v145_v50 = vadd.f32 1.0, %v144_v45  ;;  %v134_v3 = vadd.f32 1.1283791, %v133_v62 }
  0xaa   :  { %v107_v48 = vmul.f32 %v200_v46, %v105_v38  ;;  %vm112_vm1 = vweird.f32 %v200_v46 }
  0xab   :  { %201 = vrcp.f32 %v145_v50  ;;  %vm113_vm3 = vmor %vm111_vm2, %vm112_vm1  ;;  %v157_v4 = vand.u32 2147483648, %v145_v50  ;;  %v155_v9 = vand.u32 2147483647, %v145_v50  ;;  %vm151_vm6 = vweird.f32 %v145_v50 }
  0xac   :  { %v108_v51 = vsub.f32 1.0, %v107_v48  ;;  %v135_v14 = vmul.f32 %v134_v3, %v245_v15 }
  0xad   :  { %v158_v11 = vor.u32 1.1754944e-38, %v157_v4  ;;  %vm156_vm8 = vcmp.eq.f32.partialorder %v155_v9, 8.507059e+37 }
  0xae   :  { %v109_v53 = vmul.f32 %v200_v46, %v108_v51 }
  0xb0   :  { %v110_v57 = vadd.f32 %v200_v46, %v109_v53 }
  0xb1   :  { %v202_v59 = vpop.eup %201 }
  0xb2   :  { %v114_v60 = vsel %vm113_vm3, %v200_v46, %v110_v57  ;;  %v147_v63 = vmul.f32 %v202_v59, %v145_v50  ;;  %vm152_vm5 = vweird.f32 %v202_v59 }
  0xb3   :  { %v119_v0 = vsel %vm116_vm4, %v118_v61, %v114_v60  ;;  %vm153_vm7 = vmor %vm151_vm6, %vm152_vm5 }
  0xb4   :  { %v148_v2 = vsub.f32 1.0, %v147_v63  ;;  %v120_v7 = vmul.f32 %v119_v0, %v95_v1 }
  0xb6   :  { %v149_v8 = vmul.f32 %v202_v59, %v148_v2  ;;  %v188_v13 = vclamps-f32 %v120_v7, 1.0 }
  0xb8   :  { %v150_v10 = vadd.f32 %v202_v59, %v149_v8  ;;  %v163_v19 = vadd.f32 1.0, %v188_v13 }
  0xba   :  { %v154_v16 = vsel %vm153_vm7, %v202_v59, %v150_v10  ;;  %v165_v23 = vmul.f32 %v163_v19, %v79_v20 }
  0xbb   :  { %v159_v17 = vsel %vm156_vm8, %v158_v11, %v154_v16 }
  0xbc   :  { %v160_v18 = vmul.f32 %v159_v17, %v135_v14 }
  0xbe   :  { %v189_v6 = vclamps-f32 %v160_v18, 1.0 }
  0xc0   :  { %v164_v22 = vadd.f32 1.0, %v189_v6 }
  0xc2   :  { %v166_v24 = vmul.f32 %v164_v22, %v80_v21 }
  0xc4   :  { %v196_v25 = vpack.c.bf16 %v166_v24, %v165_v23 }
  0xc6   :  { %197 = vst [vmem:[%s259_s3] sm:$0xff] %v196_v25  }

// kernel: gpt3_forward.31
= control target key start
LH: loop header
LB: loop body
LE: loop exit
PB: predicated region body
PF: predicated region fallthrough
CT: control target
= control target key end

     0   :  { %vm43_vm0 = vcmask 261120   ;;  %s122_s1 = inlined_call_operand.vmem [shape: bf16[32,128], index: 1, kind: input, shape index: {}]   ;;  %s123_s0 = inlined_call_operand.vmem [shape: bf16[16,32], index: 0, kind: input, shape index: {}]   ;;  %s124_s2 = inlined_call_operand.vmem [shape: f32[16,128], index: 2, kind: output, shape index: {}]  }
   0x1   :  { %v91_v0 = vld [vmem:[%s122_s1 + $0x8] sm:$0xff]  ;;  %v90_v1 = vld [vmem:[%s122_s1] sm:$0xff] }
   0x2   :  { %53 = vmatpush.bf16.msra.mxu0 %v91_v0  ;;  %v89_v2 = vld [vmem:[%s123_s0] sm:$0xff] }
   0x6   :  { %54 = vmatpush.bf16.msra.mxu0 %v90_v1 }
   0x9   :  { %88 = vmatmul.msk.bf16.vlgmr.msra.gmra.mxu0 %vm43_vm0, %v89_v2 }
  0x86   :  { %v56_v3 = vpop.f32.mrf.mxu0 }
  0x87   :  { %70 = vst [vmem:[%s124_s2] sm:$0xff] %v56_v3 }
  0x8e   :  { %v58_v4 = vpop.f32.mrf.mxu0 }
  0x8f   :  { %71 = vst [vmem:[%s124_s2 + $0x8] sm:$0xff] %v58_v4 }

// kernel: gpt3_forward.22
= control target key start
LH: loop header
LB: loop body
LE: loop exit
PB: predicated region body
PF: predicated region fallthrough
CT: control target
= control target key end

     0   :  { %s256_s1 = inlined_call_operand.vmem [shape: bf16[128,128], index: 1, kind: input, shape index: {}]   ;;  %s257_s2 = inlined_call_operand.vmem [shape: f32[1,128], index: 2, kind: input, shape index: {}]   ;;  %s258_s0 = inlined_call_operand.vmem [shape: bf16[16,128], index: 0, kind: input, shape index: {}]   ;;  %s259_s3 = inlined_call_operand.vmem [shape: bf16[16,128], index: 3, kind: input, shape index: {}]   ;;  %s260_s4 = inlined_call_operand.vmem [shape: bf16[16,128], index: 4, kind: output, shape index: {}]  }
   0x1   :  { %v184_v0 = vld [vmem:[%s256_s1 + $0x38] sm:$0xff]  ;;  %v183_v1 = vld [vmem:[%s256_s1 + $0x30] sm:$0xff]  ;;  %v182_v2 = vld [vmem:[%s256_s1 + $0x28] sm:$0xff] }
   0x2   :  { %97 = vmatpush.bf16.msra.mxu0 %v184_v0  ;;  %v181_v3 = vld [vmem:[%s256_s1 + $0x20] sm:$0xff]  ;;  %v180_v4 = vld [vmem:[%s256_s1 + $0x18] sm:$0xff]  ;;  %v179_v5 = vld [vmem:[%s256_s1 + $0x10] sm:$0xff] }
   0x3   :  { %v178_v6 = vld [vmem:[%s256_s1 + $0x8] sm:$0xff]  ;;  %v177_v7 = vld [vmem:[%s256_s1] sm:$0xff] }
   0x4   :  { %v176_v8 = vld [vmem:[%s258_s0] sm:$0xff] }
   0x5   :  { %v194_v10 = vld [vmem:[%s257_s2] ss:$0 sm:$0xff] }
   0x6   :  { %98 = vmatpush.bf16.msra.mxu0 %v183_v1  ;;  %v186_v11 = vld [vmem:[%s259_s3] sm:$0xff]  }
   0x7   :  { %v187_v13 = vunpack.c.l.bf16 %v186_v11  ;;  %v188_v14 = vunpack.c.h.bf16 %v186_v11 }
   0xa   :  { %99 = vmatpush.bf16.msra.mxu0 %v182_v2 }
   0xe   :  { %100 = vmatpush.bf16.msra.mxu0 %v181_v3 }
  0x12   :  { %101 = vmatpush.bf16.msra.mxu0 %v180_v4 }
  0x16   :  { %102 = vmatpush.bf16.msra.mxu0 %v179_v5 }
  0x1a   :  { %103 = vmatpush.bf16.msra.mxu0 %v178_v6 }
  0x1e   :  { %104 = vmatpush.bf16.msra.mxu0 %v177_v7 }
  0x21   :  { %105 = vmatmul.bf16.vlgmr.msra.gmra.mxu0 %v176_v8 }
  0x9e   :  { %v106_v9 = vpop.f32.mrf.mxu0 }
  0x9f   :  { %v124_v12 = vadd.f32 %v194_v10, %v106_v9 }
  0xa1   :  { %v130_v17 = vadd.f32 %v187_v13, %v124_v12 }
  0xa6   :  { %v108_v15 = vpop.f32.mrf.mxu0 }
  0xa7   :  { %v125_v16 = vadd.f32 %v194_v10, %v108_v15 }
  0xa9   :  { %v131_v18 = vadd.f32 %v188_v14, %v125_v16 }
  0xab   :  { %v192_v19 = vpack.c.bf16 %v131_v18, %v130_v17 }
  0xad   :  { %193 = vst [vmem:[%s260_s4] sm:$0xff] %v192_v19  }

</bundles_post_ra>
